<compile_context>
chip_gen: v7x
topology: tpu7x:2x2x1
jax: 0.10.0
libtpu: 0.0.40
codegen_flags: <defaults>
</compile_context>

<pallas_src>
from functools import partial

import jax
import jax.numpy as jnp
import numpy as np
from jax.experimental import pallas as pl
from jax.experimental.pallas import tpu as pltpu

EPS = 1e-5


def _pick_hw_tile(hw, max_lanes=2048):
    """Largest multiple-of-128 divisor of hw (<= max_lanes); else full extent."""
    if hw % 128 != 0:
        return hw
    best = 128
    for t in range(128, min(hw, max_lanes) + 1, 128):
        if hw % t == 0:
            best = t
    return best


# -----------------------------------------------------------------------------
# Fused kernel: soft gamma/beta (content MLP + style linear + blend) + adaLIN
# -----------------------------------------------------------------------------
def _soft_adalin_kernel(c_ref, s_ref,
                        w1g_ref, b1g_ref, w1b_ref, b1b_ref,
                        w2g_ref, w2b_ref, wsg_ref, wsb_ref,
                        cols_ref, x_ref, out_ref,
                        sum_ref, ssq_ref, a_ref, b_ref,
                        *, hw_total):
    C = a_ref.shape[0]
    phase = pl.program_id(1)
    t = pl.program_id(2)

    x = x_ref[0].astype(jnp.float32)                     # (C, HW_tile)

    # ---------------- phase 0: per-channel sum / sumsq accumulation ----------
    @pl.when(phase == 0)
    def _stats():
        @pl.when(t == 0)
        def _init():
            sum_ref[...] = jnp.zeros_like(sum_ref)
            ssq_ref[...] = jnp.zeros_like(ssq_ref)
        sum_ref[...] += jnp.sum(x, axis=1, keepdims=True)
        ssq_ref[...] += jnp.sum(x * x, axis=1, keepdims=True)

    # ---------------- phase boundary: soft gamma/beta + adaLIN coefficients --
    @pl.when(jnp.logical_and(phase == 1, t == 0))
    def _coeffs():
        cols = cols_ref[...]                              # (C, 7)
        b2g, b2b = cols[:, 0:1], cols[:, 1:2]
        bsg, bsb = cols[:, 2:3], cols[:, 3:4]
        wg, wb = cols[:, 4:5], cols[:, 5:6]
        rho = cols[:, 6:7]

        c_col = c_ref[0]                                  # (C, 1) content feats
        s_row = s_ref[0]                                  # (1, C) style feats

        # Content MLP (Linear -> ReLU -> Linear), gamma / beta branches.
        # Column input -> row hidden via sublane reduction.
        hg = jnp.maximum(
            jnp.sum(w1g_ref[...] * c_col, axis=0, keepdims=True) + b1g_ref[...],
            0.0)                                          # (1, C)
        hb = jnp.maximum(
            jnp.sum(w1b_ref[...] * c_col, axis=0, keepdims=True) + b1b_ref[...],
            0.0)                                          # (1, C)
        # Row hidden -> column output via lane reduction (no in-kernel transpose).
        cg = jnp.sum(w2g_ref[...] * hg, axis=1, keepdims=True) + b2g   # (C, 1)
        cb = jnp.sum(w2b_ref[...] * hb, axis=1, keepdims=True) + b2b   # (C, 1)
        # Style linears, row input -> column output.
        sg = jnp.sum(wsg_ref[...] * s_row, axis=1, keepdims=True) + bsg
        sb = jnp.sum(wsb_ref[...] * s_row, axis=1, keepdims=True) + bsb

        gamma = (1.0 - wg) * sg + wg * cg                 # (C, 1)
        beta = (1.0 - wb) * sb + wb * cb                  # (C, 1)

        # adaLIN stats from the accumulated per-channel partials.
        sum_c = sum_ref[...]
        ssq_c = ssq_ref[...]
        n = C * hw_total

        in_mean = sum_c * (1.0 / hw_total)
        in_var = (ssq_c - hw_total * in_mean * in_mean) * (1.0 / (hw_total - 1))
        in_var = jnp.maximum(in_var, 0.0)                 # guard f32 cancellation
        rs_in = jax.lax.rsqrt(in_var + EPS)               # (C, 1), EUP

        ln_mean = jnp.sum(sum_c, keepdims=True) * (1.0 / n)              # (1, 1)
        ln_var = (jnp.sum(ssq_c, keepdims=True)
                  - n * ln_mean * ln_mean) * (1.0 / (n - 1))
        ln_var = jnp.maximum(ln_var, 0.0)
        rs_ln = jax.lax.rsqrt(ln_var + EPS)               # (1, 1), EUP

        a_ref[...] = gamma * (rho * rs_in + (1.0 - rho) * rs_ln)
        b_ref[...] = beta - gamma * (rho * in_mean * rs_in
                                     + (1.0 - rho) * ln_mean * rs_ln)

    # ---------------- phase 1: apply out = a*x + b ----------------------------
    @pl.when(phase == 1)
    def _apply():
        out_ref[0] = (a_ref[...] * x + b_ref[...]).astype(out_ref.dtype)


# -----------------------------------------------------------------------------
# Wrapper
# -----------------------------------------------------------------------------
def soft_adalin_forward(x, content_features, style_features, p,
                        *, max_tile_lanes=2048):
    B, C, H, W = x.shape
    HW = H * W
    assert HW > 1, "unbiased (ddof=1) variance requires H*W > 1"

    xf = x.reshape(B, C, HW)                              # keep HBM dtype as-is
    f32 = jnp.float32

    # ---- pack / transpose parameters once (tiny XLA ops outside the kernel) -
    w1g = p["wc1g"].astype(f32)                           # (C, C)  (in, out)
    b1g = p["bc1g"].astype(f32)                           # (1, C)
    w1b = p["wc1b"].astype(f32)
    b1b = p["bc1b"].astype(f32)
    w2gT = p["wc2g"].T.astype(f32)                        # (C_out, C_in)
    w2bT = p["wc2b"].T.astype(f32)
    wsgT = p["wsg"].T.astype(f32)
    wsbT = p["wsb"].T.astype(f32)
    # Per-channel column vectors packed into one (C, 7) array:
    # [bc2g, bc2b, bsg, bsb, w_gamma, w_beta, rho]
    cols = jnp.concatenate(
        [p["bc2g"].T, p["bc2b"].T, p["bsg"].T, p["bsb"].T,
         p["w_gamma"].T, p["w_beta"].T, p["rho"].reshape(C, 1)],
        axis=1).astype(f32)                               # (C, 7)

    c3 = content_features.reshape(B, C, 1).astype(f32)    # column layout
    s3 = style_features.reshape(B, 1, C).astype(f32)      # row layout

    tile = _pick_hw_tile(HW, max_tile_lanes)
    nT = HW // tile

    # ---- VMEM budget: double-buffered x/out tiles + params + scratch --------
    itemsize = jnp.dtype(x.dtype).itemsize
    xblk = C * tile * itemsize
    oblk = C * tile * itemsize
    param_arrays = (w1g, b1g, w1b, b1b, w2gT, w2bT, wsgT, wsbT, cols)
    param_bytes = sum(int(a.size) * 4 for a in param_arrays)
    perbatch_bytes = 2 * C * 4                            # content + style blocks
    scratch_bytes = 4 * C * 128 * 4                       # (C,1) f32 pads lanes->128
    need = (2 * (xblk + oblk)
            + 2 * (param_bytes + perbatch_bytes)          # default double-buffering
            + scratch_bytes
            + (4 << 20))                                  # compiler-internal headroom
    try:
        vmem_cap = int(pltpu.get_tpu_info().vmem_capacity_bytes)
    except Exception:
        vmem_cap = 64 << 20                               # conservative (v7x)
    vmem_limit = int(min(max(need, 16 << 20), int(0.75 * vmem_cap)))

    cost = pl.CostEstimate(
        flops=int(5 * B * C * HW + 8 * B * C * C),
        transcendentals=int(B * (C + 1)),
        bytes_accessed=int(3 * B * C * HW * itemsize      # x read twice + out write
                           + param_bytes + B * perbatch_bytes))

    kernel = partial(_soft_adalin_kernel, hw_total=HW)

    out = pl.pallas_call(
        kernel,
        grid=(B, 2, nT),                                  # (batch, phase, hw-tile)
        in_specs=[
            pl.BlockSpec((1, C, 1), lambda b, ph, t: (b, 0, 0)),     # content col
            pl.BlockSpec((1, 1, C), lambda b, ph, t: (b, 0, 0)),     # style row
            pl.BlockSpec((C, C), lambda b, ph, t: (0, 0)),           # wc1g
            pl.BlockSpec((1, C), lambda b, ph, t: (0, 0)),           # bc1g
            pl.BlockSpec((C, C), lambda b, ph, t: (0, 0)),           # wc1b
            pl.BlockSpec((1, C), lambda b, ph, t: (0, 0)),           # bc1b
            pl.BlockSpec((C, C), lambda b, ph, t: (0, 0)),           # wc2g^T
            pl.BlockSpec((C, C), lambda b, ph, t: (0, 0)),           # wc2b^T
            pl.BlockSpec((C, C), lambda b, ph, t: (0, 0)),           # wsg^T
            pl.BlockSpec((C, C), lambda b, ph, t: (0, 0)),           # wsb^T
            pl.BlockSpec((C, 7), lambda b, ph, t: (0, 0)),           # packed columns
            pl.BlockSpec((1, C, tile), lambda b, ph, t: (b, 0, t)),  # x tile
        ],
        # During phase 0 the output block index is pinned to tile 0 so no
        # garbage write-backs happen; phase 1 walks the tiles and writes them.
        out_specs=pl.BlockSpec((1, C, tile), lambda b, ph, t: (b, 0, ph * t)),
        out_shape=jax.ShapeDtypeStruct((B, C, HW), x.dtype),
        scratch_shapes=[
            pltpu.VMEM((C, 1), jnp.float32),   # per-channel sum
            pltpu.VMEM((C, 1), jnp.float32),   # per-channel sum of squares
            pltpu.VMEM((C, 1), jnp.float32),   # coefficient a
            pltpu.VMEM((C, 1), jnp.float32),   # coefficient b
        ],
        compiler_params=pltpu.CompilerParams(
            # Phase/tile axes share the stats scratch -> must stay "arbitrary".
            dimension_semantics=("parallel", "arbitrary", "arbitrary"),
            vmem_limit_bytes=vmem_limit),
        cost_estimate=cost,
    )(c3, s3, w1g, b1g, w1b, b1b, w2gT, w2bT, wsgT, wsbT, cols, xf)
    return out.reshape(B, C, H, W)


# -----------------------------------------------------------------------------
# Pure-JAX reference (mirrors the PyTorch module exactly)
# -----------------------------------------------------------------------------
def _ref_forward(x, content, style, p):
    def mlp(f, w1, b1, w2, b2):
        return jnp.maximum(f @ w1 + b1, 0.0) @ w2 + b2

    content_gamma = mlp(content, p["wc1g"], p["bc1g"], p["wc2g"], p["bc2g"])
    content_beta = mlp(content, p["wc1b"], p["bc1b"], p["wc2b"], p["bc2b"])
    style_gamma = style @ p["wsg"] + p["bsg"]
    style_beta = style @ p["wsb"] + p["bsb"]
    wg, wb = p["w_gamma"], p["w_beta"]
    gamma = (1.0 - wg) * style_gamma + wg * content_gamma
    beta = (1.0 - wb) * style_beta + wb * content_beta

    in_mean = jnp.mean(x, axis=(2, 3), keepdims=True)
    in_var = jnp.var(x, axis=(2, 3), keepdims=True, ddof=1)
    out_in = (x - in_mean) / jnp.sqrt(in_var + EPS)
    ln_mean = jnp.mean(x, axis=(1, 2, 3), keepdims=True)
    ln_var = jnp.var(x, axis=(1, 2, 3), keepdims=True, ddof=1)
    out_ln = (x - ln_mean) / jnp.sqrt(ln_var + EPS)
    rho = p["rho"].reshape(1, -1, 1, 1)
    out = rho * out_in + (1.0 - rho) * out_ln
    return out * gamma[:, :, None, None] + beta[:, :, None, None]


def _make_params(key, C):
    ks = jax.random.split(key, 14)

    def rnd(k, shape, scale=0.1):
        return (scale * jax.random.normal(k, shape)).astype(jnp.float32)

    return {
        "rho": jnp.full((1, C), 0.9, dtype=jnp.float32),     # torch inits 0.9
        "wc1g": rnd(ks[0], (C, C)), "bc1g": rnd(ks[1], (1, C)),
        "wc2g": rnd(ks[2], (C, C)), "bc2g": rnd(ks[3], (1, C)),
        "wc1b": rnd(ks[4], (C, C)), "bc1b": rnd(ks[5], (1, C)),
        "wc2b": rnd(ks[6], (C, C)), "bc2b": rnd(ks[7], (1, C)),
        "wsg": rnd(ks[8], (C, C)), "bsg": rnd(ks[9], (1, C)),
        "wsb": rnd(ks[10], (C, C)), "bsb": rnd(ks[11], (1, C)),
        # torch inits these to zeros; nonzero here to exercise the blend path.
        "w_gamma": rnd(ks[12], (1, C), scale=0.5),
        "w_beta": rnd(ks[13], (1, C), scale=0.5),
    }


# -----------------------------------------------------------------------------
if __name__ == "__main__":
    key = jax.random.PRNGKey(0)
    # Config 1 exercises the multi-tile two-phase accumulation (HW=4096 -> 2
    # tiles of 2048 lanes); config 2 exercises B=1 and a non-multiple-of-128
    # spatial size (single full-extent tile).
    for (B, C, H, W) in [(2, 8, 64, 64), (1, 16, 12, 12)]:
        key, kp, kx, kc, ksf = jax.random.split(key, 5)
        params = _make_params(kp, C)
        x = jax.random.normal(kx, (B, C, H, W), dtype=jnp.float32)
        content_features = jax.random.normal(kc, (B, C), dtype=jnp.float32)
        style_features = jax.random.normal(ksf, (B, C), dtype=jnp.float32)

        out = soft_adalin_forward(x, content_features, style_features, params)
        out = jax.block_until_ready(out)

        ref = _ref_forward(x, content_features, style_features, params)
        np.testing.assert_allclose(np.asarray(out), np.asarray(ref),
                                   rtol=2e-4, atol=2e-4)

    print("KERNEL_OK")
</pallas_src>

<mosaic_0001>
module attributes {stable_mosaic.version = 11 : i64} {
  func.func @_soft_adalin_kernel(%arg0: i32, %arg1: i32, %arg2: i32, %arg3: memref<1x8x1xf32, #tpu.memory_space<vmem>>, %arg4: memref<1x1x8xf32, #tpu.memory_space<vmem>>, %arg5: memref<8x8xf32, #tpu.memory_space<vmem>>, %arg6: memref<1x8xf32, #tpu.memory_space<vmem>>, %arg7: memref<8x8xf32, #tpu.memory_space<vmem>>, %arg8: memref<1x8xf32, #tpu.memory_space<vmem>>, %arg9: memref<8x8xf32, #tpu.memory_space<vmem>>, %arg10: memref<8x8xf32, #tpu.memory_space<vmem>>, %arg11: memref<8x8xf32, #tpu.memory_space<vmem>>, %arg12: memref<8x8xf32, #tpu.memory_space<vmem>>, %arg13: memref<8x7xf32, #tpu.memory_space<vmem>>, %arg14: memref<1x8x2048xf32, #tpu.memory_space<vmem>>, %arg15: memref<1x8x2048xf32, #tpu.memory_space<vmem>>, %arg16: memref<8x1xf32, #tpu.memory_space<vmem>>, %arg17: memref<8x1xf32, #tpu.memory_space<vmem>>, %arg18: memref<8x1xf32, #tpu.memory_space<vmem>>, %arg19: memref<8x1xf32, #tpu.memory_space<vmem>>) attributes {dimension_semantics = [#tpu.dimension_semantics<parallel>, #tpu.dimension_semantics<arbitrary>, #tpu.dimension_semantics<arbitrary>], iteration_bounds = array<i64: 2, 2, 2>, scalar_prefetch = 0 : i64, scratch_operands = 4 : i64, tpu.core_type = #tpu.core_type<tc>, window_params = [{transform_indices = @transform_0, window_bounds = array<i64: 1, 8, 1>}, {transform_indices = @transform_1, window_bounds = array<i64: 1, 1, 8>}, {pipeline_mode = #tpu.pipeline_mode<synchronous>, transform_indices = @transform_2, window_bounds = array<i64: 8, 8>}, {pipeline_mode = #tpu.pipeline_mode<synchronous>, transform_indices = @transform_3, window_bounds = array<i64: 1, 8>}, {pipeline_mode = #tpu.pipeline_mode<synchronous>, transform_indices = @transform_4, window_bounds = array<i64: 8, 8>}, {pipeline_mode = #tpu.pipeline_mode<synchronous>, transform_indices = @transform_5, window_bounds = array<i64: 1, 8>}, {pipeline_mode = #tpu.pipeline_mode<synchronous>, transform_indices = @transform_6, window_bounds = array<i64: 8, 8>}, {pipeline_mode = #tpu.pipeline_mode<synchronous>, transform_indices = @transform_7, window_bounds = array<i64: 8, 8>}, {pipeline_mode = #tpu.pipeline_mode<synchronous>, transform_indices = @transform_8, window_bounds = array<i64: 8, 8>}, {pipeline_mode = #tpu.pipeline_mode<synchronous>, transform_indices = @transform_9, window_bounds = array<i64: 8, 8>}, {pipeline_mode = #tpu.pipeline_mode<synchronous>, transform_indices = @transform_10, window_bounds = array<i64: 8, 7>}, {transform_indices = @transform_11, window_bounds = array<i64: 1, 8, 2048>}, {transform_indices = @transform_12, window_bounds = array<i64: 1, 8, 2048>}]} {
    %c0 = arith.constant 0 : index
    %c0_0 = arith.constant 0 : index
    %c0_1 = arith.constant 0 : index
    %0 = vector.load %arg14[%c0, %c0_0, %c0_1] : memref<1x8x2048xf32, #tpu.memory_space<vmem>>, vector<1x8x2048xf32>
    %1 = vector.shape_cast %0 : vector<1x8x2048xf32> to vector<8x2048xf32>
    %c0_i32 = arith.constant 0 : i32
    %2 = arith.cmpi eq, %arg1, %c0_i32 : i32
    %3 = arith.extui %2 : i1 to i32
    %c0_i32_2 = arith.constant 0 : i32
    %4 = arith.cmpi ne, %3, %c0_i32_2 : i32
    scf.if %4 {
      %c0_i32_7 = arith.constant 0 : i32
      %13 = arith.cmpi eq, %arg2, %c0_i32_7 : i32
      %14 = arith.extui %13 : i1 to i32
      %c0_i32_8 = arith.constant 0 : i32
      %15 = arith.cmpi ne, %14, %c0_i32_8 : i32
      scf.if %15 {
        %cst_18 = arith.constant 0.000000e+00 : f32
        %27 = vector.broadcast %cst_18 : f32 to vector<8x1xf32>
        %c0_19 = arith.constant 0 : index
        %c0_20 = arith.constant 0 : index
        %28 = vector.load %arg16[%c0_19, %c0_20] : memref<8x1xf32, #tpu.memory_space<vmem>>, vector<8x1xf32>
        tpu.vector_store %arg16[%c0_19, %c0_20], %27 {strides = array<i32>} : memref<8x1xf32, #tpu.memory_space<vmem>>, vector<8x1xf32>,
        %cst_21 = arith.constant 0.000000e+00 : f32
        %29 = vector.broadcast %cst_21 : f32 to vector<8x1xf32>
        %c0_22 = arith.constant 0 : index
        %c0_23 = arith.constant 0 : index
        %30 = vector.load %arg17[%c0_22, %c0_23] : memref<8x1xf32, #tpu.memory_space<vmem>>, vector<8x1xf32>
        tpu.vector_store %arg17[%c0_22, %c0_23], %29 {strides = array<i32>} : memref<8x1xf32, #tpu.memory_space<vmem>>, vector<8x1xf32>,
      } else {
      }
      %c0_9 = arith.constant 0 : index
      %c0_10 = arith.constant 0 : index
      %16 = vector.load %arg16[%c0_9, %c0_10] : memref<8x1xf32, #tpu.memory_space<vmem>>, vector<8x1xf32>
      %cst = arith.constant dense<0.000000e+00> : vector<8xf32>
      %17 = vector.multi_reduction <add>, %1, %cst [1] : vector<8x2048xf32> to vector<8xf32>
      %18 = vector.shape_cast %17 : vector<8xf32> to vector<8x1xf32>
      %19 = arith.addf %16, %18 : vector<8x1xf32>
      %c0_11 = arith.constant 0 : index
      %c0_12 = arith.constant 0 : index
      %20 = vector.load %arg16[%c0_11, %c0_12] : memref<8x1xf32, #tpu.memory_space<vmem>>, vector<8x1xf32>
      tpu.vector_store %arg16[%c0_11, %c0_12], %19 {strides = array<i32>} : memref<8x1xf32, #tpu.memory_space<vmem>>, vector<8x1xf32>,
      %c0_13 = arith.constant 0 : index
      %c0_14 = arith.constant 0 : index
      %21 = vector.load %arg17[%c0_13, %c0_14] : memref<8x1xf32, #tpu.memory_space<vmem>>, vector<8x1xf32>
      %22 = arith.mulf %1, %1 : vector<8x2048xf32>
      %cst_15 = arith.constant dense<0.000000e+00> : vector<8xf32>
      %23 = vector.multi_reduction <add>, %22, %cst_15 [1] : vector<8x2048xf32> to vector<8xf32>
      %24 = vector.shape_cast %23 : vector<8xf32> to vector<8x1xf32>
      %25 = arith.addf %21, %24 : vector<8x1xf32>
      %c0_16 = arith.constant 0 : index
      %c0_17 = arith.constant 0 : index
      %26 = vector.load %arg17[%c0_16, %c0_17] : memref<8x1xf32, #tpu.memory_space<vmem>>, vector<8x1xf32>
      tpu.vector_store %arg17[%c0_16, %c0_17], %25 {strides = array<i32>} : memref<8x1xf32, #tpu.memory_space<vmem>>, vector<8x1xf32>,
    } else {
    }
    %c1_i32 = arith.constant 1 : i32
    %5 = arith.cmpi eq, %arg1, %c1_i32 : i32
    %c0_i32_3 = arith.constant 0 : i32
    %6 = arith.cmpi eq, %arg2, %c0_i32_3 : i32
    %7 = arith.andi %5, %6 : i1
    %8 = arith.extui %7 : i1 to i32
    %c0_i32_4 = arith.constant 0 : i32
    %9 = arith.cmpi ne, %8, %c0_i32_4 : i32
    scf.if %9 {
      %c0_7 = arith.constant 0 : index
      %c0_8 = arith.constant 0 : index
      %13 = vector.load %arg13[%c0_7, %c0_8] : memref<8x7xf32, #tpu.memory_space<vmem>>, vector<8x7xf32>
      %14 = vector.extract_strided_slice %13 {offsets = [0, 0], sizes = [8, 1], strides = [1, 1]} : vector<8x7xf32> to vector<8x1xf32>
      %15 = vector.extract_strided_slice %13 {offsets = [0, 1], sizes = [8, 1], strides = [1, 1]} : vector<8x7xf32> to vector<8x1xf32>
      %16 = vector.extract_strided_slice %13 {offsets = [0, 2], sizes = [8, 1], strides = [1, 1]} : vector<8x7xf32> to vector<8x1xf32>
      %17 = vector.extract_strided_slice %13 {offsets = [0, 3], sizes = [8, 1], strides = [1, 1]} : vector<8x7xf32> to vector<8x1xf32>
      %18 = vector.extract_strided_slice %13 {offsets = [0, 4], sizes = [8, 1], strides = [1, 1]} : vector<8x7xf32> to vector<8x1xf32>
      %19 = vector.extract_strided_slice %13 {offsets = [0, 5], sizes = [8, 1], strides = [1, 1]} : vector<8x7xf32> to vector<8x1xf32>
      %20 = vector.extract_strided_slice %13 {offsets = [0, 6], sizes = [8, 1], strides = [1, 1]} : vector<8x7xf32> to vector<8x1xf32>
      %c0_9 = arith.constant 0 : index
      %c0_10 = arith.constant 0 : index
      %c0_11 = arith.constant 0 : index
      %21 = vector.load %arg3[%c0_9, %c0_10, %c0_11] : memref<1x8x1xf32, #tpu.memory_space<vmem>>, vector<1x8x1xf32>
      %22 = vector.shape_cast %21 : vector<1x8x1xf32> to vector<8x1xf32>
      %c0_12 = arith.constant 0 : index
      %c0_13 = arith.constant 0 : index
      %c0_14 = arith.constant 0 : index
      %23 = vector.load %arg4[%c0_12, %c0_13, %c0_14] : memref<1x1x8xf32, #tpu.memory_space<vmem>>, vector<1x1x8xf32>
      %24 = vector.shape_cast %23 : vector<1x1x8xf32> to vector<1x8xf32>
      %c0_15 = arith.constant 0 : index
      %c0_16 = arith.constant 0 : index
      %25 = vector.load %arg5[%c0_15, %c0_16] : memref<8x8xf32, #tpu.memory_space<vmem>>, vector<8x8xf32>
      %26 = vector.broadcast %22 : vector<8x1xf32> to vector<8x8xf32>
      %27 = arith.mulf %25, %26 : vector<8x8xf32>
      %cst = arith.constant dense<0.000000e+00> : vector<8xf32>
      %28 = vector.multi_reduction <add>, %27, %cst [0] : vector<8x8xf32> to vector<8xf32>
      %29 = vector.shape_cast %28 : vector<8xf32> to vector<1x8xf32>
      %c0_17 = arith.constant 0 : index
      %c0_18 = arith.constant 0 : index
      %30 = vector.load %arg6[%c0_17, %c0_18] : memref<1x8xf32, #tpu.memory_space<vmem>>, vector<1x8xf32>
      %31 = arith.addf %29, %30 : vector<1x8xf32>
      %cst_19 = arith.constant 0.000000e+00 : f32
      %32 = vector.broadcast %cst_19 : f32 to vector<1x8xf32>
      %33 = arith.maximumf %31, %32 : vector<1x8xf32>
      %c0_20 = arith.constant 0 : index
      %c0_21 = arith.constant 0 : index
      %34 = vector.load %arg7[%c0_20, %c0_21] : memref<8x8xf32, #tpu.memory_space<vmem>>, vector<8x8xf32>
      %35 = vector.broadcast %22 : vector<8x1xf32> to vector<8x8xf32>
      %36 = arith.mulf %34, %35 : vector<8x8xf32>
      %cst_22 = arith.constant dense<0.000000e+00> : vector<8xf32>
      %37 = vector.multi_reduction <add>, %36, %cst_22 [0] : vector<8x8xf32> to vector<8xf32>
      %38 = vector.shape_cast %37 : vector<8xf32> to vector<1x8xf32>
      %c0_23 = arith.constant 0 : index
      %c0_24 = arith.constant 0 : index
      %39 = vector.load %arg8[%c0_23, %c0_24] : memref<1x8xf32, #tpu.memory_space<vmem>>, vector<1x8xf32>
      %40 = arith.addf %38, %39 : vector<1x8xf32>
      %cst_25 = arith.constant 0.000000e+00 : f32
      %41 = vector.broadcast %cst_25 : f32 to vector<1x8xf32>
      %42 = arith.maximumf %40, %41 : vector<1x8xf32>
      %c0_26 = arith.constant 0 : index
      %c0_27 = arith.constant 0 : index
      %43 = vector.load %arg9[%c0_26, %c0_27] : memref<8x8xf32, #tpu.memory_space<vmem>>, vector<8x8xf32>
      %44 = vector.broadcast %33 : vector<1x8xf32> to vector<8x8xf32>
      %45 = arith.mulf %43, %44 : vector<8x8xf32>
      %cst_28 = arith.constant dense<0.000000e+00> : vector<8xf32>
      %46 = vector.multi_reduction <add>, %45, %cst_28 [1] : vector<8x8xf32> to vector<8xf32>
      %47 = vector.shape_cast %46 : vector<8xf32> to vector<8x1xf32>
      %48 = arith.addf %47, %14 : vector<8x1xf32>
      %c0_29 = arith.constant 0 : index
      %c0_30 = arith.constant 0 : index
      %49 = vector.load %arg10[%c0_29, %c0_30] : memref<8x8xf32, #tpu.memory_space<vmem>>, vector<8x8xf32>
      %50 = vector.broadcast %42 : vector<1x8xf32> to vector<8x8xf32>
      %51 = arith.mulf %49, %50 : vector<8x8xf32>
      %cst_31 = arith.constant dense<0.000000e+00> : vector<8xf32>
      %52 = vector.multi_reduction <add>, %51, %cst_31 [1] : vector<8x8xf32> to vector<8xf32>
      %53 = vector.shape_cast %52 : vector<8xf32> to vector<8x1xf32>
      %54 = arith.addf %53, %15 : vector<8x1xf32>
      %c0_32 = arith.constant 0 : index
      %c0_33 = arith.constant 0 : index
      %55 = vector.load %arg11[%c0_32, %c0_33] : memref<8x8xf32, #tpu.memory_space<vmem>>, vector<8x8xf32>
      %56 = vector.broadcast %24 : vector<1x8xf32> to vector<8x8xf32>
      %57 = arith.mulf %55, %56 : vector<8x8xf32>
      %cst_34 = arith.constant dense<0.000000e+00> : vector<8xf32>
      %58 = vector.multi_reduction <add>, %57, %cst_34 [1] : vector<8x8xf32> to vector<8xf32>
      %59 = vector.shape_cast %58 : vector<8xf32> to vector<8x1xf32>
      %60 = arith.addf %59, %16 : vector<8x1xf32>
      %c0_35 = arith.constant 0 : index
      %c0_36 = arith.constant 0 : index
      %61 = vector.load %arg12[%c0_35, %c0_36] : memref<8x8xf32, #tpu.memory_space<vmem>>, vector<8x8xf32>
      %62 = vector.broadcast %24 : vector<1x8xf32> to vector<8x8xf32>
      %63 = arith.mulf %61, %62 : vector<8x8xf32>
      %cst_37 = arith.constant dense<0.000000e+00> : vector<8xf32>
      %64 = vector.multi_reduction <add>, %63, %cst_37 [1] : vector<8x8xf32> to vector<8xf32>
      %65 = vector.shape_cast %64 : vector<8xf32> to vector<8x1xf32>
      %66 = arith.addf %65, %17 : vector<8x1xf32>
      %cst_38 = arith.constant 1.000000e+00 : f32
      %67 = vector.broadcast %cst_38 : f32 to vector<8x1xf32>
      %68 = arith.subf %67, %18 : vector<8x1xf32>
      %69 = arith.mulf %68, %60 : vector<8x1xf32>
      %70 = arith.mulf %18, %48 : vector<8x1xf32>
      %71 = arith.addf %69, %70 : vector<8x1xf32>
      %cst_39 = arith.constant 1.000000e+00 : f32
      %72 = vector.broadcast %cst_39 : f32 to vector<8x1xf32>
      %73 = arith.subf %72, %19 : vector<8x1xf32>
      %74 = arith.mulf %73, %66 : vector<8x1xf32>
      %75 = arith.mulf %19, %54 : vector<8x1xf32>
      %76 = arith.addf %74, %75 : vector<8x1xf32>
      %c0_40 = arith.constant 0 : index
      %c0_41 = arith.constant 0 : index
      %77 = vector.load %arg16[%c0_40, %c0_41] : memref<8x1xf32, #tpu.memory_space<vmem>>, vector<8x1xf32>
      %c0_42 = arith.constant 0 : index
      %c0_43 = arith.constant 0 : index
      %78 = vector.load %arg17[%c0_42, %c0_43] : memref<8x1xf32, #tpu.memory_space<vmem>>, vector<8x1xf32>
      %cst_44 = arith.constant 2.44140625E-4 : f32
      %79 = vector.broadcast %cst_44 : f32 to vector<8x1xf32>
      %80 = arith.mulf %77, %79 : vector<8x1xf32>
      %cst_45 = arith.constant 4.096000e+03 : f32
      %81 = vector.broadcast %cst_45 : f32 to vector<8x1xf32>
      %82 = arith.mulf %81, %80 : vector<8x1xf32>
      %83 = arith.mulf %82, %80 : vector<8x1xf32>
      %84 = arith.subf %78, %83 : vector<8x1xf32>
      %cst_46 = arith.constant 2.44200259E-4 : f32
      %85 = vector.broadcast %cst_46 : f32 to vector<8x1xf32>
      %86 = arith.mulf %84, %85 : vector<8x1xf32>
      %cst_47 = arith.constant 0.000000e+00 : f32
      %87 = vector.broadcast %cst_47 : f32 to vector<8x1xf32>
      %88 = arith.maximumf %86, %87 : vector<8x1xf32>
      %cst_48 = arith.constant 9.99999974E-6 : f32
      %89 = vector.broadcast %cst_48 : f32 to vector<8x1xf32>
      %90 = arith.addf %88, %89 : vector<8x1xf32>
      %91 = math.rsqrt %90 : vector<8x1xf32>
      %92 = vector.shape_cast %77 : vector<8x1xf32> to vector<1x8x1xf32>
      %cst_49 = arith.constant dense<0.000000e+00> : vector<1xf32>
      %93 = vector.multi_reduction <add>, %92, %cst_49 [1, 2] : vector<1x8x1xf32> to vector<1xf32>
      %94 = vector.shape_cast %93 : vector<1xf32> to vector<1x1x1xf32>
      %95 = vector.extract %94[0, 0, 0] : f32 from vector<1x1x1xf32>
      %96 = vector.broadcast %95 : f32 to vector<1x1xf32>
      %cst_50 = arith.constant 3.05175781E-5 : f32
      %97 = vector.broadcast %cst_50 : f32 to vector<1x1xf32>
      %98 = arith.mulf %96, %97 : vector<1x1xf32>
      %99 = vector.shape_cast %78 : vector<8x1xf32> to vector<1x8x1xf32>
      %cst_51 = arith.constant dense<0.000000e+00> : vector<1xf32>
      %100 = vector.multi_reduction <add>, %99, %cst_51 [1, 2] : vector<1x8x1xf32> to vector<1xf32>
      %101 = vector.shape_cast %100 : vector<1xf32> to vector<1x1x1xf32>
      %102 = vector.extract %101[0, 0, 0] : f32 from vector<1x1x1xf32>
      %103 = vector.broadcast %102 : f32 to vector<1x1xf32>
      %cst_52 = arith.constant 3.276800e+04 : f32
      %104 = vector.broadcast %cst_52 : f32 to vector<1x1xf32>
      %105 = arith.mulf %104, %98 : vector<1x1xf32>
      %106 = arith.mulf %105, %98 : vector<1x1xf32>
      %107 = arith.subf %103, %106 : vector<1x1xf32>
      %cst_53 = arith.constant 3.05185094E-5 : f32
      %108 = vector.broadcast %cst_53 : f32 to vector<1x1xf32>
      %109 = arith.mulf %107, %108 : vector<1x1xf32>
      %cst_54 = arith.constant 0.000000e+00 : f32
      %110 = vector.broadcast %cst_54 : f32 to vector<1x1xf32>
      %111 = arith.maximumf %109, %110 : vector<1x1xf32>
      %cst_55 = arith.constant 9.99999974E-6 : f32
      %112 = vector.broadcast %cst_55 : f32 to vector<1x1xf32>
      %113 = arith.addf %111, %112 : vector<1x1xf32>
      %114 = math.rsqrt %113 : vector<1x1xf32>
      %115 = arith.mulf %20, %91 : vector<8x1xf32>
      %cst_56 = arith.constant 1.000000e+00 : f32
      %116 = vector.broadcast %cst_56 : f32 to vector<8x1xf32>
      %117 = arith.subf %116, %20 : vector<8x1xf32>
      %118 = vector.broadcast %114 : vector<1x1xf32> to vector<8x1xf32>
      %119 = arith.mulf %117, %118 : vector<8x1xf32>
      %120 = arith.addf %115, %119 : vector<8x1xf32>
      %121 = arith.mulf %71, %120 : vector<8x1xf32>
      %c0_57 = arith.constant 0 : index
      %c0_58 = arith.constant 0 : index
      %122 = vector.load %arg18[%c0_57, %c0_58] : memref<8x1xf32, #tpu.memory_space<vmem>>, vector<8x1xf32>
      tpu.vector_store %arg18[%c0_57, %c0_58], %121 {strides = array<i32>} : memref<8x1xf32, #tpu.memory_space<vmem>>, vector<8x1xf32>,
      %123 = arith.mulf %20, %80 : vector<8x1xf32>
      %124 = arith.mulf %123, %91 : vector<8x1xf32>
      %cst_59 = arith.constant 1.000000e+00 : f32
      %125 = vector.broadcast %cst_59 : f32 to vector<8x1xf32>
      %126 = arith.subf %125, %20 : vector<8x1xf32>
      %127 = vector.broadcast %98 : vector<1x1xf32> to vector<8x1xf32>
      %128 = arith.mulf %126, %127 : vector<8x1xf32>
      %129 = vector.broadcast %114 : vector<1x1xf32> to vector<8x1xf32>
      %130 = arith.mulf %128, %129 : vector<8x1xf32>
      %131 = arith.addf %124, %130 : vector<8x1xf32>
      %132 = arith.mulf %71, %131 : vector<8x1xf32>
      %133 = arith.subf %76, %132 : vector<8x1xf32>
      %c0_60 = arith.constant 0 : index
      %c0_61 = arith.constant 0 : index
      %134 = vector.load %arg19[%c0_60, %c0_61] : memref<8x1xf32, #tpu.memory_space<vmem>>, vector<8x1xf32>
      tpu.vector_store %arg19[%c0_60, %c0_61], %133 {strides = array<i32>} : memref<8x1xf32, #tpu.memory_space<vmem>>, vector<8x1xf32>,
    } else {
    }
    %c1_i32_5 = arith.constant 1 : i32
    %10 = arith.cmpi eq, %arg1, %c1_i32_5 : i32
    %11 = arith.extui %10 : i1 to i32
    %c0_i32_6 = arith.constant 0 : i32
    %12 = arith.cmpi ne, %11, %c0_i32_6 : i32
    scf.if %12 {
      %c0_7 = arith.constant 0 : index
      %c0_8 = arith.constant 0 : index
      %13 = vector.load %arg18[%c0_7, %c0_8] : memref<8x1xf32, #tpu.memory_space<vmem>>, vector<8x1xf32>
      %14 = vector.broadcast %13 : vector<8x1xf32> to vector<8x2048xf32>
      %15 = arith.mulf %14, %1 : vector<8x2048xf32>
      %c0_9 = arith.constant 0 : index
      %c0_10 = arith.constant 0 : index
      %16 = vector.load %arg19[%c0_9, %c0_10] : memref<8x1xf32, #tpu.memory_space<vmem>>, vector<8x1xf32>
      %17 = vector.broadcast %16 : vector<8x1xf32> to vector<8x2048xf32>
      %18 = arith.addf %15, %17 : vector<8x2048xf32>
      %c0_11 = arith.constant 0 : index
      %c0_12 = arith.constant 0 : index
      %c0_13 = arith.constant 0 : index
      %19 = vector.load %arg15[%c0_11, %c0_12, %c0_13] : memref<1x8x2048xf32, #tpu.memory_space<vmem>>, vector<1x8x2048xf32>
      %20 = vector.shape_cast %19 : vector<1x8x2048xf32> to vector<8x2048xf32>
      %21 = vector.shape_cast %18 : vector<8x2048xf32> to vector<1x8x2048xf32>
      tpu.vector_store %arg15[%c0_11, %c0_12, %c0_13], %21 {strides = array<i32>} : memref<1x8x2048xf32, #tpu.memory_space<vmem>>, vector<1x8x2048xf32>,
    } else {
    }
    return
  }
  func.func @transform_0(%arg0: i32, %arg1: i32, %arg2: i32) -> (i32, i32, i32) {
    %c0_i32 = arith.constant 0 : i32
    %c0_i32_0 = arith.constant 0 : i32
    %c0_i32_1 = arith.constant 0 : i32
    return %arg0, %c0_i32, %c0_i32_0 : i32, i32, i32
  }
  func.func @transform_1(%arg0: i32, %arg1: i32, %arg2: i32) -> (i32, i32, i32) {
    %c0_i32 = arith.constant 0 : i32
    %c0_i32_0 = arith.constant 0 : i32
    %c0_i32_1 = arith.constant 0 : i32
    return %arg0, %c0_i32, %c0_i32_0 : i32, i32, i32
  }
  func.func @transform_2(%arg0: i32, %arg1: i32, %arg2: i32) -> (i32, i32) {
    %c0_i32 = arith.constant 0 : i32
    %c0_i32_0 = arith.constant 0 : i32
    %c0_i32_1 = arith.constant 0 : i32
    return %c0_i32, %c0_i32_0 : i32, i32
  }
  func.func @transform_3(%arg0: i32, %arg1: i32, %arg2: i32) -> (i32, i32) {
    %c0_i32 = arith.constant 0 : i32
    %c0_i32_0 = arith.constant 0 : i32
    %c0_i32_1 = arith.constant 0 : i32
    return %c0_i32, %c0_i32_0 : i32, i32
  }
  func.func @transform_4(%arg0: i32, %arg1: i32, %arg2: i32) -> (i32, i32) {
    %c0_i32 = arith.constant 0 : i32
    %c0_i32_0 = arith.constant 0 : i32
    %c0_i32_1 = arith.constant 0 : i32
    return %c0_i32, %c0_i32_0 : i32, i32
  }
  func.func @transform_5(%arg0: i32, %arg1: i32, %arg2: i32) -> (i32, i32) {
    %c0_i32 = arith.constant 0 : i32
    %c0_i32_0 = arith.constant 0 : i32
    %c0_i32_1 = arith.constant 0 : i32
    return %c0_i32, %c0_i32_0 : i32, i32
  }
  func.func @transform_6(%arg0: i32, %arg1: i32, %arg2: i32) -> (i32, i32) {
    %c0_i32 = arith.constant 0 : i32
    %c0_i32_0 = arith.constant 0 : i32
    %c0_i32_1 = arith.constant 0 : i32
    return %c0_i32, %c0_i32_0 : i32, i32
  }
  func.func @transform_7(%arg0: i32, %arg1: i32, %arg2: i32) -> (i32, i32) {
    %c0_i32 = arith.constant 0 : i32
    %c0_i32_0 = arith.constant 0 : i32
    %c0_i32_1 = arith.constant 0 : i32
    return %c0_i32, %c0_i32_0 : i32, i32
  }
  func.func @transform_8(%arg0: i32, %arg1: i32, %arg2: i32) -> (i32, i32) {
    %c0_i32 = arith.constant 0 : i32
    %c0_i32_0 = arith.constant 0 : i32
    %c0_i32_1 = arith.constant 0 : i32
    return %c0_i32, %c0_i32_0 : i32, i32
  }
  func.func @transform_9(%arg0: i32, %arg1: i32, %arg2: i32) -> (i32, i32) {
    %c0_i32 = arith.constant 0 : i32
    %c0_i32_0 = arith.constant 0 : i32
    %c0_i32_1 = arith.constant 0 : i32
    return %c0_i32, %c0_i32_0 : i32, i32
  }
  func.func @transform_10(%arg0: i32, %arg1: i32, %arg2: i32) -> (i32, i32) {
    %c0_i32 = arith.constant 0 : i32
    %c0_i32_0 = arith.constant 0 : i32
    %c0_i32_1 = arith.constant 0 : i32
    return %c0_i32, %c0_i32_0 : i32, i32
  }
  func.func @transform_11(%arg0: i32, %arg1: i32, %arg2: i32) -> (i32, i32, i32) {
    %c0_i32 = arith.constant 0 : i32
    %c0_i32_0 = arith.constant 0 : i32
    return %arg0, %c0_i32, %arg2 : i32, i32, i32
  }
  func.func @transform_12(%arg0: i32, %arg1: i32, %arg2: i32) -> (i32, i32, i32) {
    %0 = arith.muli %arg1, %arg2 : i32
    %c0_i32 = arith.constant 0 : i32
    %c0_i32_0 = arith.constant 0 : i32
    return %arg0, %c0_i32, %0 : i32, i32, i32
  }
}

</mosaic_0001>

<bundles_post_ra>
// kernel: tpu_custom_call.1
= control target key start
LH: loop header
LB: loop body
LE: loop exit
PB: predicated region body
PF: predicated region fallthrough
CT: control target
= control target key end

     0   :  { %s2284_s0 = inlined_call_operand.vmem [shape: f32[2,8,1], index: 0, kind: input, shape index: {}]   ;;  %s2285_s1 = inlined_call_operand.hbm [shape: f32[2,1,8], index: 1, kind: input, shape index: {}]   ;;  %s2286_s2 = inlined_call_operand.vmem [shape: f32[8,8], index: 2, kind: input, shape index: {}]   ;;  %s2287_s3 = inlined_call_operand.hbm [shape: f32[1,8], index: 3, kind: input, shape index: {}]   ;;  %s2288_s4 = inlined_call_operand.vmem [shape: f32[8,8], index: 4, kind: input, shape index: {}]   ;;  %s2289_s5 = inlined_call_operand.hbm [shape: f32[1,8], index: 5, kind: input, shape index: {}]   ;;  %s2290_s6 = inlined_call_operand.vmem [shape: f32[8,8], index: 6, kind: input, shape index: {}]   ;;  %s2291_s7 = inlined_call_operand.vmem [shape: f32[8,8], index: 7, kind: input, shape index: {}]   ;;  %s2292_s8 = inlined_call_operand.vmem [shape: f32[8,8], index: 8, kind: input, shape index: {}]   ;;  %s2293_s9 = inlined_call_operand.vmem [shape: f32[8,8], index: 9, kind: input, shape index: {}]   ;;  %s2294_s10 = inlined_call_operand.hbm [shape: f32[8,7], index: 10, kind: input, shape index: {}]   ;;  %s2295_s11 = inlined_call_operand.hbm [shape: f32[2,8,4096], index: 11, kind: input, shape index: {}]   ;;  %s2296_s12 = inlined_call_operand.hbm [shape: f32[2,8,4096], index: 12, kind: output, shape index: {}]  }
   0x1   :  { %2319 = sst [smem:[#allocation33_spill]] %s2284_s0 }
   0x2   :  { %2320 = sst [smem:[#allocation34_spill]] %s2285_s1 }
   0x3   :  { %2321 = sst [smem:[#allocation35_spill]] %s2286_s2 }
   0x4   :  { %2322 = sst [smem:[#allocation36_spill]] %s2287_s3 }
   0x5   :  { %2323 = sst [smem:[#allocation37_spill]] %s2288_s4 }
   0x6   :  { %2324 = sst [smem:[#allocation38_spill]] %s2289_s5 }
   0x7   :  { %2325 = sst [smem:[#allocation39_spill]] %s2290_s6 }
   0x8   :  { %2326 = sst [smem:[#allocation40_spill]] %s2291_s7 }
   0x9   :  { %2327 = sst [smem:[#allocation41_spill]] %s2292_s8 }
   0xa   :  { %2328 = sst [smem:[#allocation42_spill]] %s2293_s9 }
   0xb   :  { %2329 = sst [smem:[#allocation43_spill]] %s2294_s10 }
   0xc   :  { %2330 = sst [smem:[#allocation44_spill]] %s2295_s11 }
   0xd   :  { %2331 = sst [smem:[#allocation45_spill]] %s2296_s12 }
   0xe   :  { %17 = vsyncpa [#allocation7], 0 }
   0xf   :  { %19 = vsyncpa [#allocation7 + $0x1], 0 }
  0x10   :  { %20 = vsyncpa [#allocation10], 0 }
  0x11   :  { %21 = vsyncpa [#allocation13], 0 }
  0x12   :  { %22 = vsyncpa [#allocation8], 0 }
  0x13   :  { %24 = vsyncpa [#allocation8 + $0x1], 0  ;;  %s1672_s21 = smov 0   ;;  %s1674_s22 = smov 0  }
  0x14   :  { %s1676_s23 = smov 0   ;;  %s1678_s24 = smov 0  }
  0x15   :  { %s1680_s25 = smov 0   ;;  %s1682_s26 = smov 0  }
  0x16   :  { %s1684_s27 = smov 0   ;;  %s1686_s28 = smov 0  }
  0x17   :  { %s1688_s29 = smov 0   ;;  %s1690_s30 = smov 0  }
  0x18   :  { %s1692_s13 = smov 0   ;;  %s1694_s14 = smov 0  }
  0x19   :  { %s1696_s15 = smov 0   ;;  %s1698_s16 = smov 0  }
  0x1a   :  { %s1700_s17 = smov 0   ;;  %s1702_s18 = smov 0  }
  0x1b LB: > { %2332 = sst [smem:[#allocation21_spill]] %s1529_s21  ;;  %s1753_s19 = sadd.s32 4294967295, %s1589_s18   ;;  %s1589_s18 = sphi %s1702_s18, %s30_s18   ;;  %s1585_s17 = sphi %s1700_s17, %s2414_s17   ;;  %s1581_s16 = sphi %s1698_s16, %s2404_s16   ;;  %s1577_s15 = sphi %s1696_s15, %s2403_s15   ;;  %s1573_s14 = sphi %s1694_s14, %s2413_s14   ;;  %s1569_s13 = sphi %s1692_s13, %s2402_s13   ;;  %s1565_s30 = sphi %s1690_s30, %s2401_s30   ;;  %s1561_s29 = sphi %s1688_s29, %s2412_s29   ;;  %s1557_s28 = sphi %s1686_s28, %s2411_s28   ;;  %s1553_s27 = sphi %s1684_s27, %s2410_s27   ;;  %s1549_s26 = sphi %s1682_s26, %s2409_s26   ;;  %s1545_s25 = sphi %s1680_s25, %s2408_s25   ;;  %s1541_s24 = sphi %s1678_s24, %s2407_s24   ;;  %s1537_s23 = sphi %s1676_s23, %s2406_s23   ;;  %s1533_s22 = sphi %s1674_s22, %s2405_s22   ;;  %s1529_s21 = sphi %s1672_s21, %s2400_s21  }
  0x1c   : > { %2333 = sst [smem:[#allocation22_spill]] %s1533_s22  ;;  %s1045_s20 = sadd.s32 4294967294, %s1589_s18  }
  0x1d   : > { %2334 = sst [smem:[#allocation23_spill]] %s1565_s30  ;;  %p2302_p0 = scmp.eq.s32.totalorder %s1753_s19, 0 }
  0x1e   : > { %2335 = sst [smem:[#allocation24_spill]] %s1569_s13  ;;  %p339_p1 = scmp.ne.s32.totalorder %s1537_s23, %s1533_s22 }
  0x1f   : > { %2336 = sst [smem:[#allocation25_spill]] %s1573_s14  ;;  %p340_p2 = scmp.eq.s32.totalorder %s1753_s19, 7 }
  0x20   : > { %2337 = sst [smem:[#allocation26_spill]] %s1577_s15  ;;  %p345_p3 = scmp.ne.s32.totalorder %s1533_s22, %s1529_s21 }
  0x21   : > { %2338 = sst [smem:[#allocation27_spill]] %s1581_s16  ;;  %p346_p4 = scmp.eq.s32.totalorder %s1045_s20, 7 }
  0x22   : > { %p1763_p5 = por %p340_p2, %p339_p1  ;;  %p1046_p6 = scmp.ge.s32.totalorder %s1589_s18, 1 }
  0x23   : > { %p1768_p7 = por %p346_p4, %p345_p3  ;;  %p353_p8 = scmp.lt.s32.totalorder %s1589_s18, 9 }
  0x24   : > { %s2339_s7 = scalar_select %p1763_p5, 1, 0 }
  0x25   : > { %s2341_s4 = scalar_select %p1768_p7, 1, 0 }
  0x26   : > { %2340 = sst [smem:[#allocation28_spill]] %s2339_s7  ;;  %p1773_p9 = pnand %p1046_p6, %p353_p8 }
  0x27   : > { %2342 = sst [smem:[#allocation29_spill]] %s2341_s4  ;;  %s1591_s12 = smov [#allocation9]  }
  0x28   : > { %s2343_s6 = scalar_select %p1773_p9, 1, 0 }
  0x29   : > { %s369_s2 = sshll.u32 %s1591_s12, 4  ;;  %p1095_p10 = pneg %p1773_p9  ;;  %s370_s2 = int_to_ptr.vmem [resolvable:$true] %s369_s2 }
  0x2a   : > { %s2345_s3 = sld [smem:[#allocation36_spill]] }
  0x2b   : > { %p1781_p11 = pnand %p1095_p10, %p2302_p0 }
  0x2d   : > { %s2344_s20 = scalar_select %p1781_p11, 1, 0 }
  0x2e   : > { %p1793_p13 = pneg %p1781_p11 }
  0x30   : > { %s1271_s4 = scalar_lea.hbm %s2345_s3, 16 }
  0x31   : > { %p1272_p12 = scmp.ne.s32.totalorder %s2345_s3, %s1271_s4  ;;  %p1278_p3 = scmp.lt.u32.totalorder %s1271_s4, %s2345_s3 }
  0x33   : > { %p1274_p1 = pnand %p1793_p13, %p1272_p12 }
  0x35   : > { %p1275_p2 = pneg %p1274_p1 }
  0x37   : > { %p1280_p4 = pnand %p1278_p3, %p1275_p2 }
  0x39   : > { %1283 = shalt.err (!%p1280_p4)
}
  0x3a   : > { %s1284_s7 = scalar_lea.vmem %s370_s2, 16  ;;  %s1291_s8 = scalar_lea.vmem %s370_s2, 32 }
  0x3b   : > { %p1285_p6 = scmp.ne.s32.totalorder %s370_s2, %s1284_s7  ;;  %p1292_p0 = scmp.lt.s32.totalorder %s370_s2, %s370_s2 }
  0x3c   : > { %p1293_p7 = scmp.lt.s32.totalorder %s1291_s8, %s1284_s7 }
  0x3d   : > { %p1287_p8 = pnand %p1285_p6, %p1793_p13 }
  0x3e   : > { %p1294_p5 = por %p1293_p7, %p1292_p0 }
  0x3f   : > { %p1288_p10 = pneg %p1287_p8 }
  0x41   : > { %p1295_p9 = pnand %p1294_p5, %p1288_p10 }
  0x43   : > { %1298 = shalt.err (!%p1295_p9)
}
  0x44   : > { %1098 = dma.hbm_to_vmem [thread:$0]  (!%p1781_p11), %s2345_s3, 16, %s370_s2, [#allocation10]  }
  0x45   : > { %p89_p0 = scmp.ne.s32.totalorder %s1561_s29, %s1557_s28  ;;  %p2311_p5 = scmp.eq.s32.totalorder %s1589_s18, 0 }
  0x46   : > { %p95_p7 = scmp.ne.s32.totalorder %s1557_s28, %s1553_s27  ;;  %p2310_p9 = scmp.lt.s32.totalorder %s1589_s18, 8 }
  0x47   : > { %s424_s13 = sand.u32 1, %s1589_s18   ;;  %p91_p12 = por %p2311_p5, %p89_p0 }
  0x48   : > { %p2347_p1 = scmp.eq.s32.totalorder %s1753_s19, 0  ;;  %s426_s8 = sand.u32 1, %s1561_s29  }
  0x49   : > { %s1051_s9 = sshll.u32 %s1585_s17, 4  ;;  %s2350_s1 = sld [smem:[#allocation34_spill]] }
  0x4a   : > { %p1822_p2 = por %p2347_p1, %p95_p7  ;;  %s427_s27 = scalar_lea.vmem [#allocation6], %s426_s8 }
  0x4b   : > { %s434_s30 = sshll.u32 %s427_s27, 4  ;;  %p1837_p3 = pnand %p2310_p9, %p91_p12  ;;  %s1833_s30 = int_to_ptr.vmem [resolvable:$true] %s434_s30 }
  0x4c   : > { %s2348_s7 = scalar_select %p1822_p2, 1, 0 }
  0x4d   : > { %s1592_s3 = smov [#allocation11]   ;;  %s1843_s0 = scalar_lea.sflag [#allocation7], %s424_s13 }
  0x4e   : > { %2349 = sst [smem:[#allocation30_spill]] %s2348_s7  ;;  %s1841_s14 = sshll.u32 %s1592_s3, 4  ;;  %s384_s14 = int_to_ptr.vmem [resolvable:$true] %s1841_s14 }
  0x4f   : > { %s1831_s2 = scalar_lea.hbm %s2350_s1, %s1051_s9  ;;  %p1301_p6 = pneg %p1837_p3 }
  0x50   : > { %s1299_s9 = scalar_lea.hbm %s1831_s2, 16  ;;  %s1304_s27 = scalar_lea.hbm %s2350_s1, 32 }
  0x51   : > { %p1300_p4 = scmp.ne.s32.totalorder %s1831_s2, %s1299_s9  ;;  %p1305_p0 = scmp.lt.u32.totalorder %s1831_s2, %s2350_s1 }
  0x52   : > { %p1306_p7 = scmp.lt.u32.totalorder %s1304_s27, %s1299_s9  ;;  %p1308_p1 = scmp.lt.u32.totalorder %s1299_s9, %s1831_s2 }
  0x53   : > { %p1302_p8 = pnand %p1301_p6, %p1300_p4 }
  0x54   : > { %p1307_p12 = por %p1306_p7, %p1305_p0 }
  0x55   : > { %p1303_p10 = pneg %p1302_p8 }
  0x56   : > { %p1309_p9 = por %p1308_p1, %p1307_p12 }
  0x58   : > { %p1310_p5 = pnand %p1309_p9, %p1303_p10 }
  0x5a   : > { %1313 = shalt.err (!%p1310_p5)
}
  0x5b   : > { %s1314_s3 = scalar_lea.vmem %s1833_s30, 16  ;;  %s1593_s13 = smov [#allocation6]  }
  0x5c   : > { %p1315_p4 = scmp.ne.s32.totalorder %s1833_s30, %s1314_s3  ;;  %s1319_s8 = sshll.u32 %s1593_s13, 4  ;;  %s1320_s8 = int_to_ptr.vmem [resolvable:$false] %s1319_s8 }
  0x5d   : > { %s1321_s22 = scalar_lea.vmem %s1320_s8, 32  ;;  %p1322_p11 = scmp.lt.s32.totalorder %s1833_s30, %s1320_s8 }
  0x5e   : > { %p1317_p8 = pnand %p1315_p4, %p1301_p6  ;;  %p1323_p0 = scmp.lt.s32.totalorder %s1321_s22, %s1314_s3 }
  0x60   : > { %p1318_p2 = pneg %p1317_p8  ;;  %p1324_p7 = por %p1323_p0, %p1322_p11 }
  0x62   : > { %p1325_p12 = pnand %p1324_p7, %p1318_p2 }
  0x64   : > { %1328 = shalt.err (!%p1325_p12)
}
  0x65   : > { %1108 = dma.hbm_to_vmem [thread:$0]  (!%p1837_p3), %s1831_s2, 16, %s1833_s30, %s1843_s0  }
  0x66   : > { %s1594_s7 = smov [#allocation12]   ;;  %s2352_s5 = sld [smem:[#allocation38_spill]] }
  0x67   : > { %s406_s9 = sshll.u32 %s1594_s7, 4  ;;  %s407_s9 = int_to_ptr.vmem [resolvable:$true] %s406_s9 }
  0x6c   : > { %s1329_s13 = scalar_lea.hbm %s2352_s5, 16 }
  0x6d   : > { %p1330_p11 = scmp.ne.s32.totalorder %s2352_s5, %s1329_s13  ;;  %p1336_p2 = scmp.lt.u32.totalorder %s1329_s13, %s2352_s5 }
  0x6f   : > { %p1332_p5 = pnand %p1330_p11, %p1793_p13 }
  0x71   : > { %p1333_p9 = pneg %p1332_p5 }
  0x73   : > { %p1338_p6 = pnand %p1336_p2, %p1333_p9 }
  0x75   : > { %1341 = shalt.err (!%p1338_p6)
}
  0x76   : > { %s1342_s30 = scalar_lea.vmem %s384_s14, 16  ;;  %s1349_s2 = scalar_lea.vmem %s384_s14, 32 }
  0x77   : > { %p1343_p3 = scmp.ne.s32.totalorder %s384_s14, %s1342_s30  ;;  %p1350_p4 = scmp.lt.s32.totalorder %s384_s14, %s384_s14 }
  0x78   : > { %p1351_p8 = scmp.lt.s32.totalorder %s1349_s2, %s1342_s30 }
  0x79   : > { %p1345_p10 = pnand %p1343_p3, %p1793_p13 }
  0x7a   : > { %p1352_p0 = por %p1351_p8, %p1350_p4 }
  0x7b   : > { %p1346_p1 = pneg %p1345_p10 }
  0x7d   : > { %p1353_p7 = pnand %p1352_p0, %p1346_p1 }
  0x7f   : > { %1356 = shalt.err (!%p1353_p7)
}
  0x80   : > { %p2353_p12 = scmp.ne.s32.totalorder %s2344_s20, 0  ;;  %s2354_s10 = sld [smem:[#allocation43_spill]] }
  0x82   : > { %1101 = dma.hbm_to_vmem [thread:$0]  (!%p2353_p12), %s2352_s5, 16, %s384_s14, [#allocation10]  }
  0x86   : > { %s1357_s8 = scalar_lea.hbm %s2354_s10, 128 }
  0x87   : > { %p1358_p11 = scmp.ne.s32.totalorder %s2354_s10, %s1357_s8  ;;  %p1364_p2 = scmp.lt.u32.totalorder %s1357_s8, %s2354_s10 }
  0x89   : > { %p1360_p5 = pnand %p1358_p11, %p1793_p13 }
  0x8b   : > { %p1361_p9 = pneg %p1360_p5 }
  0x8d   : > { %p1366_p6 = pnand %p1364_p2, %p1361_p9 }
  0x8f   : > { %1369 = shalt.err (!%p1366_p6)
}
  0x90   : > { %s1370_s2 = scalar_lea.vmem %s407_s9, 128  ;;  %p1378_p4 = scmp.lt.s32.totalorder %s407_s9, %s407_s9 }
  0x91   : > { %p1371_p3 = scmp.ne.s32.totalorder %s407_s9, %s1370_s2  ;;  %p1379_p8 = scmp.lt.s32.totalorder %s1370_s2, %s1370_s2 }
  0x93   : > { %p1373_p10 = pnand %p1371_p3, %p1793_p13  ;;  %p1380_p0 = por %p1379_p8, %p1378_p4 }
  0x95   : > { %p1374_p1 = pneg %p1373_p10 }
  0x97   : > { %p1381_p7 = pnand %p1380_p0, %p1374_p1 }
  0x99   : > { %1384 = shalt.err (!%p1381_p7)
}
  0x9a   : > { %1104 = dma.hbm_to_vmem [thread:$0]  (!%p2353_p12), %s2354_s10, 128, %s407_s9, [#allocation13]  }
  0x9b   : > { %s42_s20 = sadd.s32 1, %s1577_s15  ;;  %s45_s12 = sadd.s32 1, %s1581_s16 }
  0x9c   : > { %p43_p13 = scmp.ge.s32.totalorder %s42_s20, 2  ;;  %s299_s21 = sadd.s32 1, %s1549_s26 }
  0x9d   : > { %p306_p11 = scmp.ne.s32.totalorder %s1549_s26, %s1545_s25  ;;  %p2356_p5 = scmp.eq.s32.totalorder %s1589_s18, 0 }
  0x9e   : > { %s2416_s20 = smov (%p43_p13, %s42_s20), 0  ;;  %s2418_s12 = smov (!%p43_p13, %s45_s12), %s1581_s16 }
  0x9f   : > { %2355 = sst [smem:[#allocation31_spill]] %s2416_s20  ;;  %s295_s27 = ssub.s32 %s1577_s15, %s2416_s20 }
  0xa0   : > { %p1920_p9 = por %p306_p11, %p2356_p5  ;;  %p47_p12 = scmp.ge.s32.totalorder %s2418_s12, 2 }
  0xa1   : > { %p312_p2 = scmp.ne.s32.totalorder %s1545_s25, %s1541_s24  ;;  %s322_s9 = smul.u32 %s1577_s15, %s1581_s16 }
  0xa2   : > { %s443_s8 = sand.u32 1, %s1549_s26   ;;  %s2420_s12 = smov (%p47_p12, %s2418_s12), 0 }
  0xa3   : > { %2358 = sst [smem:[#allocation32_spill]] %s2420_s12  ;;  %s2359_s3 = sadd.s32 1, %s1585_s17 }
  0xa4   : > { %s2422_s3 = smov (!%p47_p12, %s2359_s3), %s1585_s17  ;;  %p2360_p6 = scmp.eq.s32.totalorder %s1753_s19, 0 }
  0xa5   : > { %s323_s22 = smul.u32 %s2420_s12, %s2416_s20  ;;  %p51_p10 = scmp.ge.s32.totalorder %s2422_s3, 2 }
  0xa6   : > { %p1936_p3 = por %p312_p2, %p2360_p6  ;;  %s1052_s30 = sshll.u32 %s443_s8, 7 }
  0xa7   : > { %s325_s2 = ssub.s32 %s322_s9, %s323_s22  ;;  %s2424_s3 = smov (%p51_p10, %s2422_s3), 0 }
  0xa8   : > { %s1053_s24 = sshll.u32 %s1577_s15, 4  ;;  %s1054_s14 = sshll.u32 %s1585_s17, 5 }
  0xa9   : > { %s79_s7 = ssub.s32 %s1585_s17, %s2424_s3  ;;  %s451_s1 = sadd.s32 %s1054_s14, %s1053_s24 }
  0xaa   : > { %p80_p1 = scmp.eq.s32.totalorder %s79_s7, 0  ;;  %s296_s5 = sor.u32 %s295_s27, %s79_s7 }
  0xab   : > { %p297_p4 = scmp.eq.s32.totalorder %s296_s5, 0  ;;  %s326_s10 = sor.u32 %s325_s2, %s79_s7 }
  0xac   : > { %s2362_s16 = sadd.s32 1, %s1561_s29  ;;  %p327_p8 = scmp.eq.s32.totalorder %s326_s10, 0 }
  0xad   : > { %s1951_s12 = scalar_select %p80_p1, %s1561_s29, %s2362_s16  }
  0xae   : > { %s1954_s8 = scalar_select %p297_p4, %s1549_s26, %s299_s21  }
  0xaf   : > { %s1055_s9 = sshll.u32 %s451_s1, 7  ;;  %s2363_s11 = sld [smem:[#allocation44_spill]] }
  0xb0   : > { %s445_s24 = scalar_lea.vmem [#allocation14], %s1052_s30  ;;  %s2364_s5 = sadd.s32 1, %s1537_s23 }
  0xb1   : > { %s455_s27 = sshll.u32 %s445_s24, 4  ;;  %p2365_p0 = scmp.lt.s32.totalorder %s1589_s18, 8  ;;  %s1966_s27 = int_to_ptr.vmem [resolvable:$true] %s455_s27 }
  0xb2   : > { %s1964_s2 = scalar_select %p327_p8, %s1537_s23, %s2364_s5  }
  0xb3   : > { %p1972_p7 = pnand %p2365_p0, %p1920_p9 }
  0xb5   : > { %s1959_s15 = scalar_lea.hbm %s2363_s11, %s1055_s9  ;;  %p1387_p11 = pneg %p1972_p7 }
  0xb6   : > { %s1385_s10 = scalar_lea.hbm %s1959_s15, 2048  ;;  %s1390_s21 = scalar_lea.hbm %s2363_s11, 8192 }
  0xb7   : > { %p1386_p13 = scmp.ne.s32.totalorder %s1959_s15, %s1385_s10  ;;  %p1391_p9 = scmp.lt.u32.totalorder %s1959_s15, %s2363_s11 }
  0xb8   : > { %p1392_p2 = scmp.lt.u32.totalorder %s1390_s21, %s1385_s10  ;;  %p1394_p10 = scmp.lt.u32.totalorder %s1385_s10, %s1959_s15 }
  0xb9   : > { %p1388_p5 = pnand %p1387_p11, %p1386_p13 }
  0xba   : > { %p1393_p6 = por %p1392_p2, %p1391_p9 }
  0xbb   : > { %p1389_p12 = pneg %p1388_p5 }
  0xbc   : > { %p1395_p1 = por %p1394_p10, %p1393_p6 }
  0xbe   : > { %p1396_p4 = pnand %p1395_p1, %p1389_p12 }
  0xc0   : > { %1399 = shalt.err (!%p1396_p4)
}
  0xc1   : > { %s1400_s14 = scalar_lea.vmem %s1966_s27, 2048  ;;  %s1595_s7 = smov [#allocation14]  }
  0xc2   : > { %p1401_p8 = scmp.ne.s32.totalorder %s1966_s27, %s1400_s14  ;;  %s1405_s9 = sshll.u32 %s1595_s7, 4  ;;  %s1406_s9 = int_to_ptr.vmem [resolvable:$false] %s1405_s9 }
  0xc3   : > { %s1407_s22 = scalar_lea.vmem %s1406_s9, 4096  ;;  %p1408_p5 = scmp.lt.s32.totalorder %s1966_s27, %s1406_s9 }
  0xc4   : > { %p1403_p0 = pnand %p1401_p8, %p1387_p11  ;;  %p1409_p9 = scmp.lt.s32.totalorder %s1407_s22, %s1400_s14 }
  0xc6   : > { %p1404_p13 = pneg %p1403_p0  ;;  %p1410_p2 = por %p1409_p9, %p1408_p5 }
  0xc8   : > { %p1411_p6 = pnand %p1410_p2, %p1404_p13 }
  0xca   : > { %1414 = shalt.err (!%p1411_p6)
}
  0xcb   : > { %1111 = dma.hbm_to_vmem [thread:$0]  (!%p1972_p7), %s1959_s15, 2048, %s1966_s27, %s1843_s0  }
  0xcc   : > { %p2367_p12 = scmp.ne.s32.totalorder %s2343_s6, 0 }
  0xcd   : > { %s2368_s24 = sld [smem:[#allocation30_spill]] (!%p2367_p12)  ;;  %s466_s5 = sand.u32 (!%p2367_p12), 1, %s1753_s19  }
  0xce   : > { %464 = sbr.rel (%p2367_p12) target bundleno = 1274 (0x4fa), region = 68  ;;  %s468_s10 = sand.u32 (!%p2367_p12), 1, %s1557_s28  }
  0xcf   : > { %s467_s16 = scalar_lea.sflag (!%p2367_p12), [#allocation7], %s466_s5  ;;  %s2006_s20 = scalar_lea.vmem (!%p2367_p12), [#allocation6], %s468_s10 }
  0xd3   : > { %p2369_p11 = scmp.ne.s32.totalorder (!%p2367_p12), %s2368_s24, 0 }
  0xd5   : > { %1508 = dma.done.wait (%p2369_p11), %s467_s16, 16  }
  0xd6   : > { %1510 = vsyncadd (%p2369_p11), %s467_s16, 4294967280  ;;  %p2370_p10 = scmp.eq.s32.totalorder %s1753_s19, 0 }
  0xd8   : > { %1512 = dma.done.wait (%p2370_p10), [#allocation10], 32   ;;  %p2371_p7 = pmov %p2370_p10 }
  0xda   : > { %1514 = vsyncadd (%p2371_p7), [#allocation10], 4294967264  ;;  %p2372_p1 = pmov %p2371_p7 }
  0xdc   : > { %1516 = dma.done.wait (%p2372_p1), [#allocation13], 128   ;;  %p2373_p4 = pmov %p2372_p1 }
  0xdd   : > { %s488_s6 = sand.u32 1, %s1545_s25  }
  0xde   : > { %1518 = vsyncadd (%p2373_p4), [#allocation13], 4294967168  ;;  %s1060_s15 = sshll.u32 %s488_s6, 7 }
  0xdf   : > { %s490_s0 = scalar_lea.vmem [#allocation14], %s1060_s15 }
  0xe0   : > { %1520 = dma.done.wait (%p1936_p3), %s467_s16, 2048  }
  0xe1   : > { %1522 = vsyncadd (%p1936_p3), %s467_s16, 4294965248  ;;  %s2374_s27 = sld [smem:[#allocation22_spill]]  ;;  %s2376_s7 = sld [smem:[#allocation33_spill]]  ;;  %v2035_v0 = vld [vmem:[%s490_s0] sm:$0xff]  ;;  %v2037_v1 = vld [vmem:[%s490_s0 + $0x8] sm:$0xff] }
  0xe2   : > { %s2375_s1 = sld [smem:[#allocation25_spill]]  ;;  %v2039_v2 = vld [vmem:[%s490_s0 + $0x10] sm:$0xff]  ;;  %v2041_v3 = vld [vmem:[%s490_s0 + $0x18] sm:$0xff]  ;;  %v2043_v4 = vld [vmem:[%s490_s0 + $0x20] sm:$0xff]  ;;  %s2377_s22 = sld [smem:[#allocation24_spill]] }
  0xe3   : > { %v2045_v5 = vld [vmem:[%s490_s0 + $0x28] sm:$0xff]  ;;  %v2047_v6 = vld [vmem:[%s490_s0 + $0x30] sm:$0xff]  ;;  %v2049_v7 = vld [vmem:[%s490_s0 + $0x38] sm:$0xff] }
  0xe4   : > { %v2051_v8 = vld [vmem:[%s490_s0 + $0x40] sm:$0xff]  ;;  %v2053_v9 = vld [vmem:[%s490_s0 + $0x48] sm:$0xff]  ;;  %v2055_v10 = vld [vmem:[%s490_s0 + $0x50] sm:$0xff] }
  0xe5   : > { %v2057_v11 = vld [vmem:[%s490_s0 + $0x58] sm:$0xff]  ;;  %v2059_v12 = vld [vmem:[%s490_s0 + $0x60] sm:$0xff]  ;;  %v2061_v13 = vld [vmem:[%s490_s0 + $0x68] sm:$0xff] }
  0xe6   : > { %v2063_v14 = vld [vmem:[%s490_s0 + $0x70] sm:$0xff]  ;;  %v2065_v15 = vld [vmem:[%s490_s0 + $0x78] sm:$0xff] }
  0xe7   : > { %s536_s21 = sand.u32 1, %s2374_s27  }
  0xe8   : > { %p539_p8 = scmp.lt.s32.totalorder %s2375_s1, 1  ;;  %s1061_s13 = sshll.u32 %s536_s21, 7 }
  0xe9   : > { %s2067_s4 = scalar_lea.vmem [#allocation15], %s1061_s13  ;;  %p1063_p3 = scmp.ne.s32.totalorder %s2377_s22, 0 }
  0xea   : > { %s2426_s1 = smov (!%p539_p8, %s2375_s1), 1  ;;  %s2378_s24 = sld [smem:[#allocation23_spill]] (!%p1063_p3) }
  0xeb   : > { %s1062_s19 = sshll.u32 %s2426_s1, 3  ;;  %565 = sbr.rel (%p1063_p3) target bundleno = 428 (0x1ac), region = 92 }
  0xec   : > { %s2033_s9 = scalar_lea.vmem %s2376_s7, %s1062_s19 }
  0xf0   : > { %p1064_p0 = scmp.ne.s32.totalorder (!%p1063_p3), %s2378_s24, 0 }
  0xf2   : > { %569 = sbr.rel (%p1064_p0) target bundleno = 249 (0xf9), region = 96  ;;  %vm570_vm0 = vcmask (!%p1064_p0), 7168   ;;  %v1596_v16 = vmov (!%p1064_p0), 0.0  }
  0xf3   : > { %571 = vst.msk [vmem:[#allocation2] sm:$0xff] (!%p1064_p0), %vm570_vm0, %v1596_v16  ;;  %572 = vst.msk [vmem:[#allocation3] sm:$0xff] (!%p1064_p0), %vm570_vm0, %v1596_v16 }
  0xf9 PF: > { %v574_v17 = vadd.f32 %v2037_v1, %v2035_v0  ;;  %v595_v18 = vmul.f32 %v2035_v0, %v2035_v0  ;;  %v596_v19 = vmul.f32 %v2037_v1, %v2037_v1  ;;  %v597_v21 = vmul.f32 %v2039_v2, %v2039_v2 }
  0xfa   : > { %v598_v23 = vmul.f32 %v2041_v3, %v2041_v3  ;;  %v599_v26 = vmul.f32 %v2043_v4, %v2043_v4  ;;  %v600_v29 = vmul.f32 %v2045_v5, %v2045_v5  ;;  %v601_v32 = vmul.f32 %v2047_v6, %v2047_v6  ;;  %v573_v63 = vld [vmem:[#allocation2] sm:$0xff] }
  0xfb   : > { %v575_v20 = vadd.f32 %v574_v17, %v2039_v2  ;;  %v611_v24 = vadd.f32 %v596_v19, %v595_v18  ;;  %v602_v35 = vmul.f32 %v2049_v7, %v2049_v7  ;;  %v603_v38 = vmul.f32 %v2051_v8, %v2051_v8  ;;  %v594_v18 = vld [vmem:[#allocation3] sm:$0xff] }
  0xfc   : > { %v604_v41 = vmul.f32 %v2053_v9, %v2053_v9  ;;  %v605_v44 = vmul.f32 %v2055_v10, %v2055_v10  ;;  %v606_v47 = vmul.f32 %v2057_v11, %v2057_v11  ;;  %v607_v50 = vmul.f32 %v2059_v12, %v2059_v12 }
  0xfd   : > { %v576_v22 = vadd.f32 %v575_v20, %v2041_v3  ;;  %v612_v27 = vadd.f32 %v611_v24, %v597_v21  ;;  %v608_v53 = vmul.f32 %v2061_v13, %v2061_v13  ;;  %v609_v56 = vmul.f32 %v2063_v14, %v2063_v14 }
  0xfe   : > { %v610_v59 = vmul.f32 %v2065_v15, %v2065_v15  ;;  %vm592_vm1 = vcmask 7168  }
  0xff   : > { %v577_v25 = vadd.f32 %v576_v22, %v2043_v4  ;;  %v613_v30 = vadd.f32 %v612_v27, %v598_v23 }
 0x101   : > { %v578_v28 = vadd.f32 %v577_v25, %v2045_v5  ;;  %v614_v33 = vadd.f32 %v613_v30, %v599_v26 }
 0x103   : > { %v579_v31 = vadd.f32 %v578_v28, %v2047_v6  ;;  %v615_v36 = vadd.f32 %v614_v33, %v600_v29 }
 0x105   : > { %v580_v34 = vadd.f32 %v579_v31, %v2049_v7  ;;  %v616_v39 = vadd.f32 %v615_v36, %v601_v32 }
 0x107   : > { %v581_v37 = vadd.f32 %v580_v34, %v2051_v8  ;;  %v617_v42 = vadd.f32 %v616_v39, %v602_v35 }
 0x109   : > { %v582_v40 = vadd.f32 %v581_v37, %v2053_v9  ;;  %v618_v45 = vadd.f32 %v617_v42, %v603_v38 }
 0x10b   : > { %v583_v43 = vadd.f32 %v582_v40, %v2055_v10  ;;  %v619_v48 = vadd.f32 %v618_v45, %v604_v41 }
 0x10d   : > { %v584_v46 = vadd.f32 %v583_v43, %v2057_v11  ;;  %v620_v51 = vadd.f32 %v619_v48, %v605_v44 }
 0x10f   : > { %v585_v49 = vadd.f32 %v584_v46, %v2059_v12  ;;  %v621_v54 = vadd.f32 %v620_v51, %v606_v47 }
 0x111   : > { %v586_v52 = vadd.f32 %v585_v49, %v2061_v13  ;;  %v622_v57 = vadd.f32 %v621_v54, %v607_v50 }
 0x113   : > { %v587_v55 = vadd.f32 %v586_v52, %v2063_v14  ;;  %v623_v60 = vadd.f32 %v622_v57, %v608_v53 }
 0x115   : > { %v588_v58 = vadd.f32 %v587_v55, %v2065_v15  ;;  %v624_v61 = vadd.f32 %v623_v60, %v609_v56 }
 0x117   : > { %589 = vadd.xlane.f32.xlu0 %v588_v58  ;;  %v625_v62 = vadd.f32 %v624_v61, %v610_v59 }
 0x11b   : > { %626 = vadd.xlane.f32.xlu0 %v625_v62 }
 0x1a4   : > { %v590_v16 = vpop.xlane.xlu0 %589 }
 0x1a5   : > { %v591_v17 = vadd.f32 %v590_v16, %v573_v63 }
 0x1a7   : > { %593 = vst.msk [vmem:[#allocation2] sm:$0xff] %vm592_vm1, %v591_v17 }
 0x1a8   : > { %v627_v19 = vpop.xlane.xlu0 %626 }
 0x1a9   : > { %v628_v20 = vadd.f32 %v627_v19, %v594_v18 }
 0x1ab   : > { %629 = vst.msk [vmem:[#allocation3] sm:$0xff] %vm592_vm1, %v628_v20 }
 0x1ac PF: > { %s2379_s5 = sld [smem:[#allocation24_spill]]  ;;  %s2380_s10 = sld [smem:[#allocation23_spill]] }
 0x1b2   : > { %p630_p13 = scmp.eq.s32.totalorder %s2379_s5, 1  ;;  %p631_p5 = scmp.eq.s32.totalorder %s2380_s10, 0 }
 0x1b4   : > { %p632_p9 = pnand %p631_p5, %p630_p13 }
 0x1b5   : > { %v637_v21 = vld [vmem:[%s2033_s9] sm:$0xff] (!%p632_p9)  ;;  %vm740_vm2 = vcmask (!%p632_p9), 7168   ;;  %v731_v23 = vld [vmem:[#allocation3] sm:$0xff] (!%p632_p9)  ;;  %v1597_v24 = vmov (!%p632_p9), 0   ;;  %vm646_vm3 = vcmask (!%p632_p9), 64512   ;;  %s2381_s15 = sld [smem:[#allocation41_spill]] (!%p632_p9)  ;;  %v670_v45 = vlaneseq (!%p632_p9) }
 0x1b6   : > { %635 = sbr.rel (%p632_p9) target bundleno = 1091 (0x443), region = 100  ;;  %v730_v22 = vld [vmem:[#allocation2] sm:$0xff] (!%p632_p9)  ;;  %1265 = vset.pattern.permute.xlu0 (!%p632_p9), %v1597_v24  ;;  %v753_v26 = vsel (!%p632_p9), %vm740_vm2, %v731_v23, 0.0  ;;  %s1598_s0 = smov (!%p632_p9), 6  }
 0x1b7   : > { %v732_v25 = vmul.f32 (!%p632_p9), 0.00024414063, %v730_v22  ;;  %v1065_v27 = vld [vmem:[%s2006_s20] ss:$0 sm:$0xff] (!%p632_p9)  ;;  %642 = vperm.xlu0 (!%p632_p9), %1265, %v637_v21   ;;  %754 = vadd.xlane.f32.xlu1 (!%p632_p9), %v753_v26  ;;  %s2382_s20 = sld [smem:[#allocation42_spill]] (!%p632_p9)  ;;  %v741_v35 = vsel (!%p632_p9), %vm740_vm2, %v730_v22, 0.0  ;;  %s2383_s30 = sld [smem:[#allocation35_spill]] (!%p632_p9) }
 0x1b8   : > { %v671_v48 = vshrl.u32 (!%p632_p9), %v670_v45, 7  ;;  %v654_v49 = vld [vmem:[#allocation9] sm:$0x1] (!%p632_p9)  ;;  %v2138_v57 = vld [vmem:[#allocation12] sm:$0xff] (!%p632_p9)  ;;  %s2384_s9 = sld [smem:[#allocation39_spill]] (!%p632_p9)  ;;  %s1599_s22 = smov (!%p632_p9), 2  }
 0x1b9   : > { %v733_v30 = vmul.f32 (!%p632_p9), 4096.0, %v732_v25  ;;  %s2385_s10 = sld [smem:[#allocation37_spill]] (!%p632_p9)  ;;  %s1600_s1 = smov (!%p632_p9), 4  }
 0x1ba   : > { %v672_v53 = vsub.s32 (!%p632_p9), 0, %v671_v48  ;;  %s1602_s13 = smov (!%p632_p9), 1   ;;  %s1603_s19 = smov (!%p632_p9), 124  }
 0x1bb   : > { %v689_v28 = vld [vmem:[%s2381_s15] sm:$0xff] (!%p632_p9)  ;;  %v734_v32 = vmul.f32 (!%p632_p9), %v733_v30, %v732_v25  ;;  %s2386_s15 = sld [smem:[#allocation40_spill]] (!%p632_p9) }
 0x1bc   : > { %v696_v29 = vmul.f32 (!%p632_p9), %v1065_v27, %v689_v28 }
 0x1bd   : > { %v735_v33 = vsub.f32 %v731_v23, %v734_v32  ;;  %v701_v34 = vld [vmem:[%s2382_s20] sm:$0xff]  ;;  %s1601_s20 = smov 126  }
 0x1be   : > { %v697_v31 = vsel %vm646_vm3, %v696_v29, 0.0  ;;  %v702_v36 = vmul.f32 %v1065_v27, %v701_v34  ;;  %v639_v38 = vld [vmem:[%s2383_s30] sm:$0xff]  ;;  %s1604_s30 = smov 123  }
 0x1bf   : > { %698 = vadd.xlane.f32.xlu1 %v697_v31  ;;  %v736_v54 = vmul.f32 0.00024420026, %v735_v33  ;;  %v669_v58 = vld [vmem:[%s2384_s9] sm:$0xff] }
 0x1c0   : > { %v703_v37 = vsel %vm646_vm3, %v702_v36, 0.0  ;;  %v657_v17 = vld [vmem:[%s2385_s10] sm:$0xff] }
 0x1c1   : > { %v737_v61 = vmax.f32 %v736_v54, 0.0 }
 0x1c3   : > { %v738_v16 = vadd.f32 1e-05, %v737_v61 }
 0x1c5   : > { %1266 = vrsqrt.f32 %v738_v16 }
 0x1cf   : > { %v1267_v22 = vpop.eup %1266 }
 0x1d0   : > { %789 = vrot.lane.b32.xlu1 %v732_v25, %s1598_s0 }
 0x1d6   : > { %742 = vadd.xlane.f32.xlu0 %v741_v35 }
 0x1da   : > { %704 = vadd.xlane.f32.xlu0 %v703_v37 }
 0x236   : > { %v643_v39 = vpop.permute.xlu0 %642 }
 0x237   : > { %v645_v40 = vmul.f32 %v643_v39, %v639_v38  ;;  %v658_v18 = vmul.f32 %v657_v17, %v643_v39 }
 0x239   : > { %v647_v41 = vsel %vm646_vm3, %v645_v40, 0.0  ;;  %v659_v19 = vsel %vm646_vm3, %v658_v18, 0.0  ;;  %v666_v40 = vld [vmem:[#allocation11] sm:$0x1] }
 0x23a   : > { %v648_v42 = vrot.slane %v647_v41, 4  ;;  %v660_v21 = vrot.slane %v659_v19, 4 }
 0x23c   : > { %v649_v43 = vadd.f32 %v648_v42, %v647_v41  ;;  %v661_v24 = vadd.f32 %v660_v21, %v659_v19 }
 0x23e   : > { %v650_v44 = vrot.slane %v649_v43, 2  ;;  %v662_v26 = vrot.slane %v661_v24, 2 }
 0x240   : > { %v651_v46 = vadd.f32 %v650_v44, %v649_v43  ;;  %v663_v31 = vadd.f32 %v662_v26, %v661_v24  ;;  %v679_v44 = vld [vmem:[%s2386_s15] sm:$0xff] }
 0x242   : > { %v652_v47 = vrot.slane %v651_v46, 1  ;;  %v664_v35 = vrot.slane %v663_v31, 1 }
 0x244   : > { %v653_v50 = vadd.f32 %v652_v47, %v651_v46  ;;  %v755_v51 = vpop.xlane.xlu1 %754  ;;  %v665_v39 = vadd.f32 %v664_v35, %v663_v31 }
 0x245   : > { %v756_v20 = vrot.slane %v755_v51, 4 }
 0x246   : > { %v655_v52 = vadd.f32 %v654_v49, %v653_v50  ;;  %v667_v41 = vadd.f32 %v666_v40, %v665_v39 }
 0x247   : > { %v757_v23 = vadd.f32 %v756_v20, %v755_v51 }
 0x248   : > { %v656_v55 = vmax.f32 %v655_v52, 0.0  ;;  %v668_v42 = vmax.f32 %v667_v41, 0.0 }
 0x249   : > { %v758_v25 = vrot.slane %v757_v23, 2 }
 0x24a   : > { %v673_v60 = vrot.slane %v656_v55, %v672_v53  ;;  %v683_v43 = vrot.slane %v668_v42, %v672_v53 }
 0x24b   : > { %v759_v29 = vadd.f32 %v758_v25, %v757_v23 }
 0x24c   : > { %v699_v56 = vpop.xlane.xlu1 %698  ;;  %v674_v62 = vmul.f32 %v673_v60, %v669_v58  ;;  %v684_v45 = vmul.f32 %v683_v43, %v679_v44  ;;  %v707_v58 = vsub.f32 1.0, %v2138_v57 }
 0x24d   : > { %v700_v59 = vadd.f32 %v699_v56, %v2138_v57  ;;  %v760_v33 = vrot.slane %v759_v29, 1 }
 0x24e   : > { %v675_v63 = vsel %vm646_vm3, %v674_v62, 0.0  ;;  %v685_v46 = vsel %vm646_vm3, %v684_v45, 0.0 }
 0x24f   : > { %709 = vrot.lane.b32.xlu0 %v700_v59, %s1599_s22  ;;  %676 = vadd.xlane.f32.xlu1 %v675_v63  ;;  %v761_v37 = vadd.f32 %v760_v33, %v759_v29 }
 0x250   : > { %v790_v53 = vpop.permute.xlu1 %789 }
 0x251   : > { %v792_v63 = vmul.f32 %v790_v53, %v2138_v57 }
 0x260   : > { %772 = vrot.lane.b32.xlu1 %v1267_v22, %s1598_s0 }
 0x263   : > { %v743_v27 = vpop.xlane.xlu0 %742 }
 0x264   : > { %v744_v28 = vrot.slane %v743_v27, 4 }
 0x266   : > { %v745_v30 = vadd.f32 %v744_v28, %v743_v27 }
 0x267   : > { %v705_v19 = vpop.xlane.xlu0 %704 }
 0x268   : > { %v746_v32 = vrot.slane %v745_v30, 2  ;;  %v706_v21 = vadd.f32 %v705_v19, %v2138_v57 }
 0x26a   : > { %v747_v34 = vadd.f32 %v746_v32, %v745_v30 }
 0x26c   : > { %v748_v36 = vrot.slane %v747_v34, 1 }
 0x26e   : > { %v749_v38 = vadd.f32 %v748_v36, %v747_v34 }
 0x270   : > { %1073 = vpush %v749_v38 }
 0x271   : > { %1075 = vpush %v761_v37 }
 0x284   : > { %686 = vadd.xlane.f32.xlu1 %v685_v46 }
 0x2a1   : > { %s1074_s0 = spop %1073 }
 0x2a2   : > { %v751_v47 = vstv %s1074_s0  ;;  %s1076_s27 = spop %1075 }
 0x2a3   : > { %v752_v48 = vmul.f32 3.0517578e-05, %v751_v47  ;;  %v763_v51 = vstv %s1076_s27 }
 0x2a5   : > { %v764_v49 = vmul.f32 32768.0, %v752_v48  ;;  %v794_v60 = vmul.f32 %v752_v48, %v707_v58 }
 0x2a7   : > { %v765_v50 = vmul.f32 %v764_v49, %v752_v48 }
 0x2a9   : > { %v766_v52 = vsub.f32 %v763_v51, %v765_v50 }
 0x2ab   : > { %v767_v54 = vmul.f32 3.051851e-05, %v766_v52 }
 0x2ad   : > { %v768_v55 = vmax.f32 %v767_v54, 0.0 }
 0x2af   : > { %v769_v56 = vadd.f32 1e-05, %v768_v55 }
 0x2b1   : > { %1268 = vrsqrt.f32 %v769_v56 }
 0x2bb   : > { %v1269_v62 = vpop.eup %1268 }
 0x2bc   : > { %v795_v18 = vmul.f32 %v1269_v62, %v794_v60  ;;  %v776_v23 = vmul.f32 %v1269_v62, %v707_v58 }
 0x2c1   : > { %v710_v27 = vpop.permute.xlu0 %709 }
 0x2c2   : > { %v712_v30 = vmul.f32 %v710_v27, %v707_v58 }
 0x2dc   : > { %v677_v59 = vpop.xlane.xlu1 %676 }
 0x2dd   : > { %v678_v61 = vadd.f32 %v677_v59, %v2138_v57 }
 0x2df   : > { %714 = vrot.lane.b32.xlu0 %v678_v61, %s1600_s1 }
 0x2e0   : > { %v773_v16 = vpop.permute.xlu1 %772 }
 0x2e1   : > { %v793_v17 = vmul.f32 %v792_v63, %v773_v16  ;;  %v775_v22 = vmul.f32 %v773_v16, %v2138_v57 }
 0x2e3   : > { %v796_v20 = vadd.f32 %v795_v18, %v793_v17  ;;  %v777_v24 = vadd.f32 %v776_v23, %v775_v22 }
 0x2e5   : > { %798 = vrot.lane.b32.xlu0 %v796_v20, %s1601_s20 }
 0x2e9   : > { %720 = vrot.lane.b32.xlu0 %v706_v21, %s1599_s22 }
 0x2ed   : > { %779 = vrot.lane.b32.xlu0 %v777_v24, %s1601_s20 }
 0x311   : > { %v687_v25 = vpop.xlane.xlu1 %686 }
 0x312   : > { %v688_v26 = vadd.f32 %v687_v25, %v2138_v57 }
 0x314   : > { %725 = vrot.lane.b32.xlu1 %v688_v26, %s1600_s1 }
 0x351   : > { %v715_v28 = vpop.permute.xlu0 %714 }
 0x352   : > { %v717_v29 = vmul.f32 %v715_v28, %v2138_v57 }
 0x354   : > { %v718_v31 = vadd.f32 %v717_v29, %v712_v30 }
 0x357   : > { %v799_v32 = vpop.permute.xlu0 %798 }
 0x358   : > { %v801_v33 = vmul.f32 %v799_v32, %v718_v31 }
 0x35a   : > { %803 = vrot.lane.b32.xlu0 %v801_v33, %s1602_s13 }
 0x35b   : > { %v721_v34 = vpop.permute.xlu0 %720 }
 0x35c   : > { %v723_v38 = vmul.f32 %v721_v34, %v707_v58 }
 0x35f   : > { %v780_v35 = vpop.permute.xlu0 %779 }
 0x360   : > { %v782_v36 = vmul.f32 %v780_v35, %v718_v31 }
 0x362   : > { %784 = vrot.lane.b32.xlu0 %v782_v36, %s1603_s19 }
 0x386   : > { %v726_v37 = vpop.permute.xlu1 %725 }
 0x387   : > { %v728_v39 = vmul.f32 %v726_v37, %v2138_v57 }
 0x389   : > { %v729_v40 = vadd.f32 %v728_v39, %v723_v38 }
 0x3cc   : > { %v804_v41 = vpop.permute.xlu0 %803 }
 0x3cd   : > { %v806_v42 = vsub.f32 %v729_v40, %v804_v41 }
 0x3cf   : > { %808 = vrot.lane.b32.xlu0 %v806_v42, %s1604_s30 }
 0x3d4   : > { %v785_v43 = vpop.permute.xlu0 %784 }
 0x3d5   : > { %787 = vst.msk [vmem:[#allocation4] sm:$0xff] %vm740_vm2, %v785_v43 }
 0x441   : > { %v809_v44 = vpop.permute.xlu0 %808 }
 0x442   : > { %811 = vst.msk [vmem:[#allocation5] sm:$0xff] %vm740_vm2, %v809_v44 }
 0x443 PF: > { %s2387_s14 = sld [smem:[#allocation24_spill]] }
 0x449   : > { %p1066_p2 = scmp.ne.s32.totalorder %s2387_s14, 1 }
 0x44a   : > { %v815_v45 = vld [vmem:[#allocation4] sm:$0xff] (!%p1066_p2)  ;;  %v1605_v46 = vmov (!%p1066_p2), 0   ;;  %v837_v57 = vld [vmem:[#allocation5] sm:$0xff] (!%p1066_p2) }
 0x44b   : > { %814 = sbr.rel (%p1066_p2) target bundleno = 1243 (0x4db), region = 104  ;;  %1270 = vset.pattern.permute.xlu0 (!%p1066_p2), %v1605_v46 }
 0x44c   : > { %818 = vperm.xlu0 (!%p1066_p2), %1270, %v815_v45  }
 0x450   : > { %840 = vperm.xlu0 (!%p1066_p2), %1270, %v837_v57  }
 0x4cb   : > { %v819_v47 = vpop.permute.xlu0 %818 }
 0x4cc   : > { %v821_v48 = vmul.f32 %v819_v47, %v2035_v0  ;;  %v822_v49 = vmul.f32 %v819_v47, %v2037_v1  ;;  %v823_v50 = vmul.f32 %v819_v47, %v2039_v2  ;;  %v824_v51 = vmul.f32 %v819_v47, %v2041_v3 }
 0x4cd   : > { %v825_v52 = vmul.f32 %v819_v47, %v2043_v4  ;;  %v826_v54 = vmul.f32 %v819_v47, %v2045_v5  ;;  %v827_v55 = vmul.f32 %v819_v47, %v2047_v6  ;;  %v828_v56 = vmul.f32 %v819_v47, %v2049_v7 }
 0x4ce   : > { %v829_v53 = vmul.f32 %v819_v47, %v2051_v8  ;;  %v830_v58 = vmul.f32 %v819_v47, %v2053_v9  ;;  %v831_v0 = vmul.f32 %v819_v47, %v2055_v10  ;;  %v832_v1 = vmul.f32 %v819_v47, %v2057_v11 }
 0x4cf   : > { %v833_v2 = vmul.f32 %v819_v47, %v2059_v12  ;;  %v834_v3 = vmul.f32 %v819_v47, %v2061_v13  ;;  %v835_v4 = vmul.f32 %v819_v47, %v2063_v14  ;;  %v836_v5 = vmul.f32 %v819_v47, %v2065_v15  ;;  %v841_v6 = vpop.permute.xlu0 %840 }
 0x4d0   : > { %v843_v7 = vadd.f32 %v841_v6, %v821_v48  ;;  %v844_v8 = vadd.f32 %v841_v6, %v822_v49  ;;  %v845_v9 = vadd.f32 %v841_v6, %v823_v50  ;;  %v846_v59 = vadd.f32 %v841_v6, %v824_v51 }
 0x4d1   : > { %v847_v10 = vadd.f32 %v841_v6, %v825_v52  ;;  %v848_v11 = vadd.f32 %v841_v6, %v826_v54  ;;  %v849_v12 = vadd.f32 %v841_v6, %v827_v55  ;;  %v850_v13 = vadd.f32 %v841_v6, %v828_v56 }
 0x4d2   : > { %v851_v60 = vadd.f32 %v841_v6, %v829_v53  ;;  %v852_v14 = vadd.f32 %v841_v6, %v830_v58  ;;  %v853_v15 = vadd.f32 %v841_v6, %v831_v0  ;;  %v854_v61 = vadd.f32 %v841_v6, %v832_v1  ;;  %859 = vst [vmem:[%s2067_s4] sm:$0xff] %v843_v7 }
 0x4d3   : > { %860 = vst [vmem:[%s2067_s4 + $0x8] sm:$0xff] %v844_v8  ;;  %861 = vst [vmem:[%s2067_s4 + $0x10] sm:$0xff] %v845_v9  ;;  %v855_v62 = vadd.f32 %v841_v6, %v833_v2  ;;  %v856_v63 = vadd.f32 %v841_v6, %v834_v3  ;;  %v857_v16 = vadd.f32 %v841_v6, %v835_v4 }
 0x4d4   : > { %862 = vst [vmem:[%s2067_s4 + $0x18] sm:$0xff] %v846_v59  ;;  %v858_v17 = vadd.f32 %v841_v6, %v836_v5  ;;  %863 = vst [vmem:[%s2067_s4 + $0x20] sm:$0xff] %v847_v10 }
 0x4d5   : > { %864 = vst [vmem:[%s2067_s4 + $0x28] sm:$0xff] %v848_v11  ;;  %865 = vst [vmem:[%s2067_s4 + $0x30] sm:$0xff] %v849_v12 }
 0x4d6   : > { %866 = vst [vmem:[%s2067_s4 + $0x38] sm:$0xff] %v850_v13  ;;  %867 = vst [vmem:[%s2067_s4 + $0x40] sm:$0xff] %v851_v60 }
 0x4d7   : > { %868 = vst [vmem:[%s2067_s4 + $0x48] sm:$0xff] %v852_v14  ;;  %869 = vst [vmem:[%s2067_s4 + $0x50] sm:$0xff] %v853_v15 }
 0x4d8   : > { %870 = vst [vmem:[%s2067_s4 + $0x58] sm:$0xff] %v854_v61  ;;  %871 = vst [vmem:[%s2067_s4 + $0x60] sm:$0xff] %v855_v62 }
 0x4d9   : > { %872 = vst [vmem:[%s2067_s4 + $0x68] sm:$0xff] %v856_v63  ;;  %873 = vst [vmem:[%s2067_s4 + $0x70] sm:$0xff] %v857_v16 }
 0x4da   : > { %874 = vst [vmem:[%s2067_s4 + $0x78] sm:$0xff] %v858_v17 }
 0x4db PF: > { %s2388_s7 = sld [smem:[#allocation24_spill]]  ;;  %s2389_s9 = sld [smem:[#allocation23_spill]] }
 0x4dc   : > { %s2390_s22 = sld [smem:[#allocation25_spill]]  ;;  %s2392_s5 = sld [smem:[#allocation28_spill]] }
 0x4dd   : > { %s893_s6 = sshll.u32 %s2067_s4, 4  ;;  %s2393_s13 = sld [smem:[#allocation45_spill]]  ;;  %s2203_s6 = int_to_ptr.vmem [resolvable:$true] %s893_s6 }
 0x4de   : > { %s876_s14 = scalar_lea.sflag [#allocation8], %s536_s21  ;;  %s1415_s11 = scalar_lea.vmem %s2203_s6, 2048 }
 0x4df   : > { %p1416_p6 = scmp.ne.s32.totalorder %s2203_s6, %s1415_s11  ;;  %s1606_s4 = smov [#allocation15]  }
 0x4e1   : > { %s883_s10 = smul.u32 %s2389_s9, %s2388_s7  ;;  %s1419_s7 = sshll.u32 %s1606_s4, 4  ;;  %s1420_s7 = int_to_ptr.vmem [resolvable:$false] %s1419_s7 }
 0x4e2   : > { %s1069_s16 = sshll.u32 %s2390_s22, 5  ;;  %p2395_p12 = scmp.ne.s32.totalorder %s2392_s5, 0 }
 0x4e3   : > { %s1068_s15 = sshll.u32 %s883_s10, 4  ;;  %s2394_s19 = smov %s2393_s13 }
 0x4e4   : > { %s889_s0 = sadd.s32 %s1069_s16, %s1068_s15  ;;  %p1417_p11 = pnand %p1416_p6, %p2395_p12 }
 0x4e5   : > { %s1070_s27 = sshll.u32 %s889_s0, 7  ;;  %s1421_s9 = scalar_lea.vmem %s1420_s7, 4096 }
 0x4e6   : > { %s891_s30 = scalar_lea.hbm %s2393_s13, %s1070_s27  ;;  %p1418_p10 = pneg %p1417_p11 }
 0x4e7   : > { %p1422_p7 = scmp.lt.s32.totalorder %s2203_s6, %s1420_s7  ;;  %p1423_p1 = scmp.lt.s32.totalorder %s1421_s9, %s1415_s11 }
 0x4e9   : > { %p1424_p4 = por %p1423_p1, %p1422_p7 }
 0x4eb   : > { %p1425_p8 = pnand %p1424_p4, %p1418_p10 }
 0x4ed   : > { %1428 = shalt.err (!%p1425_p8)
}
 0x4ee   : > { %s1429_s22 = scalar_lea.hbm %s891_s30, 2048  ;;  %s1433_s10 = scalar_lea.hbm %s2394_s19, 8192 }
 0x4ef   : > { %p1430_p3 = scmp.ne.s32.totalorder %s891_s30, %s1429_s22  ;;  %p1434_p5 = scmp.lt.u32.totalorder %s891_s30, %s2394_s19 }
 0x4f0   : > { %p1435_p9 = scmp.lt.u32.totalorder %s1433_s10, %s1429_s22  ;;  %p1437_p6 = scmp.lt.u32.totalorder %s1429_s22, %s891_s30 }
 0x4f1   : > { %p1431_p0 = pnand %p1430_p3, %p2395_p12 }
 0x4f2   : > { %p1436_p2 = por %p1435_p9, %p1434_p5 }
 0x4f3   : > { %p1432_p13 = pneg %p1431_p0 }
 0x4f4   : > { %p1438_p11 = por %p1437_p6, %p1436_p2 }
 0x4f6   : > { %p1439_p10 = pnand %p1438_p11, %p1432_p13 }
 0x4f8   : > { %1442 = shalt.err (!%p1439_p10)
}
 0x4f9   : > { %1093 = dma.vmem_to_hbm [thread:$0]  (%p2395_p12), %s2203_s6, 2048, %s891_s30, %s876_s14  }
 0x4fa PF: > { %s2396_s11 = sld [smem:[#allocation21_spill]]  ;;  %s2397_s0 = sld [smem:[#allocation29_spill]] }
 0x4fb   : > { %p1123_p7 = scmp.ge.s32.totalorder %s1589_s18, 2 }
 0x500   : > { %s905_s27 = sand.u32 1, %s2396_s11   ;;  %p2398_p1 = scmp.ne.s32.totalorder %s2397_s0, 0 }
 0x501   : > { %s906_s1 = scalar_lea.sflag [#allocation8], %s905_s27 }
 0x502   : > { %p1113_p4 = pnand %p1123_p7, %p2398_p1 }
 0x504   : > { %1524 = dma.done.wait (!%p1113_p4), %s906_s1, 2048  }
 0x505   : > { %1526 = vsyncadd (!%p1113_p4), %s906_s1, 4294965248  ;;  %s30_s18 = sadd.s32 1, %s1589_s18   ;;  %s2400_s21 = sld [smem:[#allocation22_spill]] }
 0x506   : > { %p2231_p8 = scmp.ge.s32.totalorder %s30_s18, 10   ;;  %s2401_s30 = sld [smem:[#allocation26_spill]] }
 0x507   : > { %s2402_s13 = sld [smem:[#allocation27_spill]]  ;;  %s2403_s15 = sld [smem:[#allocation31_spill]] }
 0x508   : > { %s2404_s16 = sld [smem:[#allocation32_spill]]  ;;  %s2405_s22 = smov %s1537_s23 }
 0x509   : > { %s2406_s23 = smov %s1964_s2  ;;  %s2407_s24 = smov %s1545_s25 }
 0x50a   : > { %s2408_s25 = smov %s1549_s26  ;;  %s2409_s26 = smov %s1954_s8 }
 0x50b   : > { %s2410_s27 = smov %s1557_s28  ;;  %s2411_s28 = smov %s1561_s29 }
 0x50c   : > { %s2412_s29 = smov %s1951_s12  ;;  %s2413_s14 = smov %s1585_s17 }
 0x50d   : > { %s2414_s17 = smov %s2424_s3  ;;  %29 = sbr.rel (!%p2231_p8) target bundleno = 27 (0x1b), region = 155 }
 0x514   :  { %911 = vsyncpa [#allocation7], 1 }
 0x515   :  { %913 = vsyncpa [#allocation7 + $0x1], 1 }
 0x516   :  { %914 = vsyncpa [#allocation10], 1 }
 0x517   :  { %915 = vsyncpa [#allocation13], 1 }
 0x518   :  { %916 = vsyncpa [#allocation8], 1 }
 0x519   :  { %918 = vsyncpa [#allocation8 + $0x1], 1 }

</bundles_post_ra>
